<compile_context>
chip_gen: v7x
topology: tpu7x:2x2x1
jax: 0.10.0
libtpu: 0.0.40
codegen_flags: <defaults>
</compile_context>

<pallas_src>
import functools

import jax
import jax.numpy as jnp
from jax.experimental import pallas as pl
from jax.experimental.pallas import tpu as pltpu

CIN, COUT, KH, KW = 128, 256, 3, 3
K_IM2COL = KH * KW * CIN  # 1152
NEG_SLOPE = 0.2


def _resdis_fused_kernel(pee_ref, peo_ref, poe_ref, poo_ref,
                         wm_ref, bm_ref, wsc_ref, bsc_ref,
                         out_ref, patch_ref, *, g, ho, wo):
    """One grid step = `g` images.

    Assembles the [g*ho*wo, 9*CIN] im2col tile in VMEM from the four even/odd phase
    slabs (unit-stride slices only), then a single K=1152 MXU matmul + bias +
    LeakyReLU + center-tap shortcut + sigmoid, all in f32 epilogue.
    """
    m = g * ho * wo
    phases = ((pee_ref, peo_ref), (poe_ref, poo_ref))
    center = None
    for kh in range(KH):
        for kw in range(KW):
            ph = phases[kh % 2][kw % 2]
            a, b = kh // 2, kw // 2
            tap = ph[:, a:a + ho, b:b + wo, :]            # [g, ho, wo, CIN] bf16
            tap2d = tap.reshape(m, CIN)
            t = kh * KW + kw
            patch_ref[:, t * CIN:(t + 1) * CIN] = tap2d   # 128-lane-aligned store
            if t == 4:                                    # center tap == 1x1 s2 shortcut input
                center = tap2d

    # main path: one big K=1152 bf16 matmul, f32 accumulation on the MXU
    main = jnp.dot(patch_ref[...], wm_ref[...], preferred_element_type=jnp.float32)
    main = main + bm_ref[...]
    main = jnp.maximum(main, NEG_SLOPE * main)            # LeakyReLU(0.2), 2 VPU ops

    # shortcut path: 1x1 stride-2 conv on the center tap
    sc = jnp.dot(center, wsc_ref[...], preferred_element_type=jnp.float32)
    sc = sc + bsc_ref[...]

    # residual add + sigmoid (divide kept on the EUP slot via approx reciprocal)
    y = main + sc
    out = pl.reciprocal(1.0 + jnp.exp(-y), approx=True)
    out_ref[...] = out.reshape(g, ho, wo, COUT).astype(out_ref.dtype)


def init_params(key):
    k1, k2, k3, k4 = jax.random.split(key, 4)
    lim_m = (CIN * KH * KW) ** -0.5                       # PyTorch conv default-style bound
    w_main = jax.random.uniform(k1, (KH, KW, CIN, COUT), jnp.float32, -lim_m, lim_m)
    b_main = jax.random.uniform(k2, (COUT,), jnp.float32, -lim_m, lim_m)
    lim_s = CIN ** -0.5
    w_sc = jax.random.uniform(k3, (CIN, COUT), jnp.float32, -lim_s, lim_s)
    b_sc = jax.random.uniform(k4, (COUT,), jnp.float32, -lim_s, lim_s)
    return w_main, b_main, w_sc, b_sc


def gan_dis_ae_patch_forward(rois_features, params, *, img_block=None,
                             out_layout="NCHW", kernel_out_dtype=jnp.bfloat16):
    """rois_features: NCHW float32 [N, 128, H, W] -> [N, 256, ceil(H/2), ceil(W/2)]."""
    w_main, b_main, w_sc, b_sc = params
    N, C, H, W = rois_features.shape
    assert C == CIN, f"ResDis_cluster hard-codes {CIN} input channels, got {C}"

    Ho = (H - 1) // 2 + 1
    Wo = (W - 1) // 2 + 1
    M_img = Ho * Wo

    # NCHW -> NHWC (channels -> lanes), bf16, +1 halo pad.  XLA fuses cast/pad and
    # folds the phase slices below into the same producer pass, so the raw input
    # makes one bf16 HBM pass (no materialized im2col round trip).
    x = jnp.transpose(rois_features, (0, 2, 3, 1)).astype(jnp.bfloat16)
    xp = jnp.pad(x, ((0, 0), (1, 1), (1, 1), (0, 0)))

    # Even/odd phase decomposition: tap (kh,kw) of the stride-2 conv is a UNIT-STRIDE
    # window of phase (kh%2, kw%2), so the kernel never needs stride-2 slices.
    p_ee = xp[:, 0::2, 0::2, :]
    p_eo = xp[:, 0::2, 1::2, :]
    p_oe = xp[:, 1::2, 0::2, :]
    p_oo = xp[:, 1::2, 1::2, :]
    He, We = p_ee.shape[1], p_ee.shape[2]
    Hod, Wod = p_oo.shape[1], p_oo.shape[2]

    # Images per grid step: target ~2048 matmul rows per step (amortizes ~0.35us/step
    # overhead, stays well inside v7x's 64 MiB/TC VMEM incl. double buffering).
    # Partial final image block (N % img_block != 0) is handled by Pallas masking.
    if img_block is None:
        img_block = max(1, 2048 // max(M_img, 1))
    img_block = max(1, min(img_block, N))
    grid_n = pl.cdiv(N, img_block)
    m_tile = img_block * M_img

    wm2 = w_main.reshape(K_IM2COL, COUT).astype(jnp.bfloat16)   # [3,3,Cin,Cout] -> [9*Cin,Cout]
    bm2 = b_main.reshape(1, COUT)                               # biases stay f32 (f32 epilogue)
    wsc2 = w_sc.reshape(CIN, COUT).astype(jnp.bfloat16)
    bsc2 = b_sc.reshape(1, COUT)

    kernel = functools.partial(_resdis_fused_kernel, g=img_block, ho=Ho, wo=Wo)

    out = pl.pallas_call(
        kernel,
        out_shape=jax.ShapeDtypeStruct((N, Ho, Wo, COUT), kernel_out_dtype),
        grid_spec=pltpu.PrefetchScalarGridSpec(
            num_scalar_prefetch=0,
            grid=(grid_n,),
            in_specs=[
                pl.BlockSpec((img_block, He, We, CIN), lambda n: (n, 0, 0, 0)),   # even/even
                pl.BlockSpec((img_block, He, Wod, CIN), lambda n: (n, 0, 0, 0)),  # even/odd
                pl.BlockSpec((img_block, Hod, We, CIN), lambda n: (n, 0, 0, 0)),  # odd/even
                pl.BlockSpec((img_block, Hod, Wod, CIN), lambda n: (n, 0, 0, 0)), # odd/odd
                pl.BlockSpec((K_IM2COL, COUT), lambda n: (0, 0)),                 # main weights (resident)
                pl.BlockSpec((1, COUT), lambda n: (0, 0)),                        # main bias
                pl.BlockSpec((CIN, COUT), lambda n: (0, 0)),                      # shortcut weights
                pl.BlockSpec((1, COUT), lambda n: (0, 0)),                        # shortcut bias
            ],
            out_specs=pl.BlockSpec((img_block, Ho, Wo, COUT), lambda n: (n, 0, 0, 0)),
            scratch_shapes=[pltpu.VMEM((m_tile, K_IM2COL), jnp.bfloat16)],        # on-chip im2col tile
        ),
        compiler_params=pltpu.CompilerParams(
            dimension_semantics=("parallel",),
            vmem_limit_bytes=48 * 1024 * 1024),
    )(p_ee, p_eo, p_oe, p_oo, wm2, bm2, wsc2, bsc2)

    if out_layout == "NHWC":
        return out                                        # cheapest handoff (no transpose)
    # NHWC -> NCHW (PyTorch convention); f32 upcast fuses into the transpose pass.
    return jnp.transpose(out, (0, 3, 1, 2)).astype(jnp.float32)


def reference_forward(x_nchw, params):
    """Pure-JAX f32 reference of the same inferred block (for correctness check)."""
    w_main, b_main, w_sc, b_sc = params
    x = jnp.transpose(x_nchw, (0, 2, 3, 1))
    main = jax.lax.conv_general_dilated(
        x, w_main, window_strides=(2, 2), padding=((1, 1), (1, 1)),
        dimension_numbers=("NHWC", "HWIO", "NHWC")) + b_main
    main = jnp.where(main > 0, main, NEG_SLOPE * main)
    sc = jax.lax.conv_general_dilated(
        x, w_sc.reshape(1, 1, CIN, COUT), window_strides=(2, 2),
        padding=((0, 0), (0, 0)),
        dimension_numbers=("NHWC", "HWIO", "NHWC")) + b_sc
    out = jax.nn.sigmoid(main + sc)
    return jnp.transpose(out, (0, 3, 1, 2))


if __name__ == "__main__":
    key = jax.random.PRNGKey(0)
    k_param, k_x = jax.random.split(key)
    params = init_params(k_param)

    # Small shapes consistent with the module: 128 input channels (hard-coded in
    # ResDis_cluster), batch=2, spatial 16x16 -> output [2, 256, 8, 8].
    rois_features = jax.random.normal(k_x, (2, CIN, 16, 16), jnp.float32)

    fwd = jax.jit(lambda x: gan_dis_ae_patch_forward(x, params))
    out = jax.block_until_ready(fwd(rois_features))

    ref = jax.block_until_ready(reference_forward(rois_features, params))
    assert out.shape == (2, COUT, 8, 8), out.shape
    # bf16 matmul inputs + bf16 writeback vs f32 reference -> relaxed tolerance
    assert jnp.allclose(out, ref, rtol=2e-2, atol=2e-2), "mismatch vs pure-JAX reference"

    print("KERNEL_OK")
</pallas_src>

<mosaic_0001>
module attributes {stable_mosaic.version = 11 : i64} {
  func.func @_resdis_fused_kernel(%arg0: i32, %arg1: memref<2x9x9x128xbf16, #tpu.memory_space<vmem>>, %arg2: memref<2x9x9x128xbf16, #tpu.memory_space<vmem>>, %arg3: memref<2x9x9x128xbf16, #tpu.memory_space<vmem>>, %arg4: memref<2x9x9x128xbf16, #tpu.memory_space<vmem>>, %arg5: memref<1152x256xbf16, #tpu.memory_space<vmem>>, %arg6: memref<1x256xf32, #tpu.memory_space<vmem>>, %arg7: memref<128x256xbf16, #tpu.memory_space<vmem>>, %arg8: memref<1x256xf32, #tpu.memory_space<vmem>>, %arg9: memref<2x8x8x256xbf16, #tpu.memory_space<vmem>>, %arg10: memref<128x1152xbf16, #tpu.memory_space<vmem>>) attributes {dimension_semantics = [#tpu.dimension_semantics<parallel>], iteration_bounds = array<i64: 1>, scalar_prefetch = 0 : i64, scratch_operands = 1 : i64, tpu.core_type = #tpu.core_type<tc>, window_params = [{transform_indices = @transform_0, window_bounds = array<i64: 2, 9, 9, 128>}, {transform_indices = @transform_1, window_bounds = array<i64: 2, 9, 9, 128>}, {transform_indices = @transform_2, window_bounds = array<i64: 2, 9, 9, 128>}, {transform_indices = @transform_3, window_bounds = array<i64: 2, 9, 9, 128>}, {pipeline_mode = #tpu.pipeline_mode<synchronous>, transform_indices = @transform_4, window_bounds = array<i64: 1152, 256>}, {pipeline_mode = #tpu.pipeline_mode<synchronous>, transform_indices = @transform_5, window_bounds = array<i64: 1, 256>}, {pipeline_mode = #tpu.pipeline_mode<synchronous>, transform_indices = @transform_6, window_bounds = array<i64: 128, 256>}, {pipeline_mode = #tpu.pipeline_mode<synchronous>, transform_indices = @transform_7, window_bounds = array<i64: 1, 256>}, {transform_indices = @transform_8, window_bounds = array<i64: 2, 8, 8, 256>}]} {
    %c0 = arith.constant 0 : index
    %c0_0 = arith.constant 0 : index
    %c0_1 = arith.constant 0 : index
    %c0_2 = arith.constant 0 : index
    %0 = vector.load %arg1[%c0, %c0_0, %c0_1, %c0_2] : memref<2x9x9x128xbf16, #tpu.memory_space<vmem>>, vector<2x8x8x128xbf16>
    %1 = vector.shape_cast %0 : vector<2x8x8x128xbf16> to vector<128x128xbf16>
    %c0_3 = arith.constant 0 : index
    %c0_4 = arith.constant 0 : index
    %2 = vector.load %arg10[%c0_3, %c0_4] : memref<128x1152xbf16, #tpu.memory_space<vmem>>, vector<128x128xbf16>
    tpu.vector_store %arg10[%c0_3, %c0_4], %1 {strides = array<i32>} : memref<128x1152xbf16, #tpu.memory_space<vmem>>, vector<128x128xbf16>,
    %c0_5 = arith.constant 0 : index
    %c0_6 = arith.constant 0 : index
    %c0_7 = arith.constant 0 : index
    %c0_8 = arith.constant 0 : index
    %3 = vector.load %arg2[%c0_5, %c0_6, %c0_7, %c0_8] : memref<2x9x9x128xbf16, #tpu.memory_space<vmem>>, vector<2x8x8x128xbf16>
    %4 = vector.shape_cast %3 : vector<2x8x8x128xbf16> to vector<128x128xbf16>
    %c0_9 = arith.constant 0 : index
    %c128 = arith.constant 128 : index
    %5 = vector.load %arg10[%c0_9, %c128] : memref<128x1152xbf16, #tpu.memory_space<vmem>>, vector<128x128xbf16>
    tpu.vector_store %arg10[%c0_9, %c128], %4 {strides = array<i32>} : memref<128x1152xbf16, #tpu.memory_space<vmem>>, vector<128x128xbf16>,
    %c0_10 = arith.constant 0 : index
    %c0_11 = arith.constant 0 : index
    %c1 = arith.constant 1 : index
    %c0_12 = arith.constant 0 : index
    %6 = vector.load %arg1[%c0_10, %c0_11, %c1, %c0_12] : memref<2x9x9x128xbf16, #tpu.memory_space<vmem>>, vector<2x8x8x128xbf16>
    %7 = vector.shape_cast %6 : vector<2x8x8x128xbf16> to vector<128x128xbf16>
    %c0_13 = arith.constant 0 : index
    %c256 = arith.constant 256 : index
    %8 = vector.load %arg10[%c0_13, %c256] : memref<128x1152xbf16, #tpu.memory_space<vmem>>, vector<128x128xbf16>
    tpu.vector_store %arg10[%c0_13, %c256], %7 {strides = array<i32>} : memref<128x1152xbf16, #tpu.memory_space<vmem>>, vector<128x128xbf16>,
    %c0_14 = arith.constant 0 : index
    %c0_15 = arith.constant 0 : index
    %c0_16 = arith.constant 0 : index
    %c0_17 = arith.constant 0 : index
    %9 = vector.load %arg3[%c0_14, %c0_15, %c0_16, %c0_17] : memref<2x9x9x128xbf16, #tpu.memory_space<vmem>>, vector<2x8x8x128xbf16>
    %10 = vector.shape_cast %9 : vector<2x8x8x128xbf16> to vector<128x128xbf16>
    %c0_18 = arith.constant 0 : index
    %c384 = arith.constant 384 : index
    %11 = vector.load %arg10[%c0_18, %c384] : memref<128x1152xbf16, #tpu.memory_space<vmem>>, vector<128x128xbf16>
    tpu.vector_store %arg10[%c0_18, %c384], %10 {strides = array<i32>} : memref<128x1152xbf16, #tpu.memory_space<vmem>>, vector<128x128xbf16>,
    %c0_19 = arith.constant 0 : index
    %c0_20 = arith.constant 0 : index
    %c0_21 = arith.constant 0 : index
    %c0_22 = arith.constant 0 : index
    %12 = vector.load %arg4[%c0_19, %c0_20, %c0_21, %c0_22] : memref<2x9x9x128xbf16, #tpu.memory_space<vmem>>, vector<2x8x8x128xbf16>
    %13 = vector.shape_cast %12 : vector<2x8x8x128xbf16> to vector<128x128xbf16>
    %c0_23 = arith.constant 0 : index
    %c512 = arith.constant 512 : index
    %14 = vector.load %arg10[%c0_23, %c512] : memref<128x1152xbf16, #tpu.memory_space<vmem>>, vector<128x128xbf16>
    tpu.vector_store %arg10[%c0_23, %c512], %13 {strides = array<i32>} : memref<128x1152xbf16, #tpu.memory_space<vmem>>, vector<128x128xbf16>,
    %c0_24 = arith.constant 0 : index
    %c0_25 = arith.constant 0 : index
    %c1_26 = arith.constant 1 : index
    %c0_27 = arith.constant 0 : index
    %15 = vector.load %arg3[%c0_24, %c0_25, %c1_26, %c0_27] : memref<2x9x9x128xbf16, #tpu.memory_space<vmem>>, vector<2x8x8x128xbf16>
    %16 = vector.shape_cast %15 : vector<2x8x8x128xbf16> to vector<128x128xbf16>
    %c0_28 = arith.constant 0 : index
    %c640 = arith.constant 640 : index
    %17 = vector.load %arg10[%c0_28, %c640] : memref<128x1152xbf16, #tpu.memory_space<vmem>>, vector<128x128xbf16>
    tpu.vector_store %arg10[%c0_28, %c640], %16 {strides = array<i32>} : memref<128x1152xbf16, #tpu.memory_space<vmem>>, vector<128x128xbf16>,
    %c0_29 = arith.constant 0 : index
    %c1_30 = arith.constant 1 : index
    %c0_31 = arith.constant 0 : index
    %c0_32 = arith.constant 0 : index
    %18 = vector.load %arg1[%c0_29, %c1_30, %c0_31, %c0_32] : memref<2x9x9x128xbf16, #tpu.memory_space<vmem>>, vector<2x8x8x128xbf16>
    %19 = vector.shape_cast %18 : vector<2x8x8x128xbf16> to vector<128x128xbf16>
    %c0_33 = arith.constant 0 : index
    %c768 = arith.constant 768 : index
    %20 = vector.load %arg10[%c0_33, %c768] : memref<128x1152xbf16, #tpu.memory_space<vmem>>, vector<128x128xbf16>
    tpu.vector_store %arg10[%c0_33, %c768], %19 {strides = array<i32>} : memref<128x1152xbf16, #tpu.memory_space<vmem>>, vector<128x128xbf16>,
    %c0_34 = arith.constant 0 : index
    %c1_35 = arith.constant 1 : index
    %c0_36 = arith.constant 0 : index
    %c0_37 = arith.constant 0 : index
    %21 = vector.load %arg2[%c0_34, %c1_35, %c0_36, %c0_37] : memref<2x9x9x128xbf16, #tpu.memory_space<vmem>>, vector<2x8x8x128xbf16>
    %22 = vector.shape_cast %21 : vector<2x8x8x128xbf16> to vector<128x128xbf16>
    %c0_38 = arith.constant 0 : index
    %c896 = arith.constant 896 : index
    %23 = vector.load %arg10[%c0_38, %c896] : memref<128x1152xbf16, #tpu.memory_space<vmem>>, vector<128x128xbf16>
    tpu.vector_store %arg10[%c0_38, %c896], %22 {strides = array<i32>} : memref<128x1152xbf16, #tpu.memory_space<vmem>>, vector<128x128xbf16>,
    %c0_39 = arith.constant 0 : index
    %c1_40 = arith.constant 1 : index
    %c1_41 = arith.constant 1 : index
    %c0_42 = arith.constant 0 : index
    %24 = vector.load %arg1[%c0_39, %c1_40, %c1_41, %c0_42] : memref<2x9x9x128xbf16, #tpu.memory_space<vmem>>, vector<2x8x8x128xbf16>
    %25 = vector.shape_cast %24 : vector<2x8x8x128xbf16> to vector<128x128xbf16>
    %c0_43 = arith.constant 0 : index
    %c1024 = arith.constant 1024 : index
    %26 = vector.load %arg10[%c0_43, %c1024] : memref<128x1152xbf16, #tpu.memory_space<vmem>>, vector<128x128xbf16>
    tpu.vector_store %arg10[%c0_43, %c1024], %25 {strides = array<i32>} : memref<128x1152xbf16, #tpu.memory_space<vmem>>, vector<128x128xbf16>,
    %c0_44 = arith.constant 0 : index
    %c0_45 = arith.constant 0 : index
    %27 = vector.load %arg10[%c0_44, %c0_45] : memref<128x1152xbf16, #tpu.memory_space<vmem>>, vector<128x1152xbf16>
    %c0_46 = arith.constant 0 : index
    %c0_47 = arith.constant 0 : index
    %28 = vector.load %arg5[%c0_46, %c0_47] : memref<1152x256xbf16, #tpu.memory_space<vmem>>, vector<1152x256xbf16>
    %cst = arith.constant dense<0.000000e+00> : vector<128x256xf32>
    %29 = tpu.matmul %27, %28, %cst {dimension_numbers = #tpu.dot_dimension_numbers<[1], [0], [0], [1], [0, 0, 1, 1], [], []>} : vector<128x1152xbf16>, vector<1152x256xbf16>, vector<128x256xf32> -> vector<128x256xf32>
    %c0_48 = arith.constant 0 : index
    %c0_49 = arith.constant 0 : index
    %30 = vector.load %arg6[%c0_48, %c0_49] : memref<1x256xf32, #tpu.memory_space<vmem>>, vector<1x256xf32>
    %31 = vector.broadcast %30 : vector<1x256xf32> to vector<128x256xf32>
    %32 = arith.addf %29, %31 : vector<128x256xf32>
    %cst_50 = arith.constant 2.000000e-01 : f32
    %33 = vector.broadcast %cst_50 : f32 to vector<128x256xf32>
    %34 = arith.mulf %33, %32 : vector<128x256xf32>
    %35 = arith.maximumf %32, %34 : vector<128x256xf32>
    %c0_51 = arith.constant 0 : index
    %c0_52 = arith.constant 0 : index
    %36 = vector.load %arg7[%c0_51, %c0_52] : memref<128x256xbf16, #tpu.memory_space<vmem>>, vector<128x256xbf16>
    %cst_53 = arith.constant dense<0.000000e+00> : vector<128x256xf32>
    %37 = tpu.matmul %13, %36, %cst_53 {dimension_numbers = #tpu.dot_dimension_numbers<[1], [0], [0], [1], [0, 0, 1, 1], [], []>} : vector<128x128xbf16>, vector<128x256xbf16>, vector<128x256xf32> -> vector<128x256xf32>
    %c0_54 = arith.constant 0 : index
    %c0_55 = arith.constant 0 : index
    %38 = vector.load %arg8[%c0_54, %c0_55] : memref<1x256xf32, #tpu.memory_space<vmem>>, vector<1x256xf32>
    %39 = vector.broadcast %38 : vector<1x256xf32> to vector<128x256xf32>
    %40 = arith.addf %37, %39 : vector<128x256xf32>
    %41 = arith.addf %35, %40 : vector<128x256xf32>
    %cst_56 = arith.constant 0.000000e+00 : f32
    %42 = vector.broadcast %cst_56 : f32 to vector<128x256xf32>
    %43 = arith.subf %42, %41 : vector<128x256xf32>
    %44 = math.exp %43 : vector<128x256xf32>
    %cst_57 = arith.constant 1.000000e+00 : f32
    %45 = vector.broadcast %cst_57 : f32 to vector<128x256xf32>
    %46 = arith.addf %45, %44 : vector<128x256xf32>
    %47 = tpu.reciprocal %46 {approx = true} : vector<128x256xf32> -> vector<128x256xf32>
    %48 = vector.shape_cast %47 : vector<128x256xf32> to vector<2x8x8x256xf32>
    %49 = arith.truncf %48 : vector<2x8x8x256xf32> to vector<2x8x8x256xbf16>
    %c0_58 = arith.constant 0 : index
    %c0_59 = arith.constant 0 : index
    %c0_60 = arith.constant 0 : index
    %c0_61 = arith.constant 0 : index
    %50 = vector.load %arg9[%c0_58, %c0_59, %c0_60, %c0_61] : memref<2x8x8x256xbf16, #tpu.memory_space<vmem>>, vector<2x8x8x256xbf16>
    tpu.vector_store %arg9[%c0_58, %c0_59, %c0_60, %c0_61], %49 {strides = array<i32>} : memref<2x8x8x256xbf16, #tpu.memory_space<vmem>>, vector<2x8x8x256xbf16>,
    return
  }
  func.func @transform_0(%arg0: i32) -> (i32, i32, i32, i32) {
    %c0_i32 = arith.constant 0 : i32
    %c0_i32_0 = arith.constant 0 : i32
    %c0_i32_1 = arith.constant 0 : i32
    %c0_i32_2 = arith.constant 0 : i32
    return %arg0, %c0_i32, %c0_i32_0, %c0_i32_1 : i32, i32, i32, i32
  }
  func.func @transform_1(%arg0: i32) -> (i32, i32, i32, i32) {
    %c0_i32 = arith.constant 0 : i32
    %c0_i32_0 = arith.constant 0 : i32
    %c0_i32_1 = arith.constant 0 : i32
    %c0_i32_2 = arith.constant 0 : i32
    return %arg0, %c0_i32, %c0_i32_0, %c0_i32_1 : i32, i32, i32, i32
  }
  func.func @transform_2(%arg0: i32) -> (i32, i32, i32, i32) {
    %c0_i32 = arith.constant 0 : i32
    %c0_i32_0 = arith.constant 0 : i32
    %c0_i32_1 = arith.constant 0 : i32
    %c0_i32_2 = arith.constant 0 : i32
    return %arg0, %c0_i32, %c0_i32_0, %c0_i32_1 : i32, i32, i32, i32
  }
  func.func @transform_3(%arg0: i32) -> (i32, i32, i32, i32) {
    %c0_i32 = arith.constant 0 : i32
    %c0_i32_0 = arith.constant 0 : i32
    %c0_i32_1 = arith.constant 0 : i32
    %c0_i32_2 = arith.constant 0 : i32
    return %arg0, %c0_i32, %c0_i32_0, %c0_i32_1 : i32, i32, i32, i32
  }
  func.func @transform_4(%arg0: i32) -> (i32, i32) {
    %c0_i32 = arith.constant 0 : i32
    %c0_i32_0 = arith.constant 0 : i32
    %c0_i32_1 = arith.constant 0 : i32
    return %c0_i32, %c0_i32_0 : i32, i32
  }
  func.func @transform_5(%arg0: i32) -> (i32, i32) {
    %c0_i32 = arith.constant 0 : i32
    %c0_i32_0 = arith.constant 0 : i32
    %c0_i32_1 = arith.constant 0 : i32
    return %c0_i32, %c0_i32_0 : i32, i32
  }
  func.func @transform_6(%arg0: i32) -> (i32, i32) {
    %c0_i32 = arith.constant 0 : i32
    %c0_i32_0 = arith.constant 0 : i32
    %c0_i32_1 = arith.constant 0 : i32
    return %c0_i32, %c0_i32_0 : i32, i32
  }
  func.func @transform_7(%arg0: i32) -> (i32, i32) {
    %c0_i32 = arith.constant 0 : i32
    %c0_i32_0 = arith.constant 0 : i32
    %c0_i32_1 = arith.constant 0 : i32
    return %c0_i32, %c0_i32_0 : i32, i32
  }
  func.func @transform_8(%arg0: i32) -> (i32, i32, i32, i32) {
    %c0_i32 = arith.constant 0 : i32
    %c0_i32_0 = arith.constant 0 : i32
    %c0_i32_1 = arith.constant 0 : i32
    %c0_i32_2 = arith.constant 0 : i32
    return %arg0, %c0_i32, %c0_i32_0, %c0_i32_1 : i32, i32, i32, i32
  }
}

</mosaic_0001>

<bundles_post_ra>
// kernel: _lambda_.1
= control target key start
LH: loop header
LB: loop body
LE: loop exit
PB: predicated region body
PF: predicated region fallthrough
CT: control target
= control target key end

     0   :  { %vm206_vm0 = vsmask.f32 3328  ;;  %vm207_vm1 = vsmask.f32 7440  ;;  %s5776_s4 = inlined_call_operand.vmem [shape: bf16[1152,256], index: 4, kind: input, shape index: {}]   ;;  %s5777_s1 = inlined_call_operand.vmem [shape: bf16[2,9,9,128], index: 1, kind: input, shape index: {}]   ;;  %s5778_s2 = inlined_call_operand.vmem [shape: bf16[2,9,9,128], index: 2, kind: input, shape index: {}]   ;;  %s5779_s0 = inlined_call_operand.vmem [shape: bf16[2,9,9,128], index: 0, kind: input, shape index: {}]   ;;  %s5780_s3 = inlined_call_operand.vmem [shape: bf16[2,9,9,128], index: 3, kind: input, shape index: {}]   ;;  %s5781_s6 = inlined_call_operand.vmem [shape: bf16[128,256], index: 6, kind: input, shape index: {}]   ;;  %s5782_s5 = inlined_call_operand.vmem [shape: f32[1,256], index: 5, kind: input, shape index: {}]   ;;  %s5783_s7 = inlined_call_operand.vmem [shape: f32[1,256], index: 7, kind: input, shape index: {}]   ;;  %s5784_s8 = inlined_call_operand.vmem [shape: bf16[2,8,8,256], index: 8, kind: output, shape index: {}]  }
   0x1   :  { %v3982_v0 = vld [vmem:[%s5776_s4 + $0x4] ss:$8 sps:$4 sm:$0xff]   ;;  %v3986_v2 = vld [vmem:[%s5776_s4] ss:$8 sps:$4 sm:$0xff]   ;;  %v3988_v4 = vld [vmem:[%s5776_s4 + $0x14] ss:$8 sps:$4 sm:$0xff]  }
   0x2   :  { %v3984_v1 = vld [vmem:[%s5776_s4 + $0x204] ss:$8 sps:$4 sm:$0xff]   ;;  %2303 = vmatprep.subr.bf16.mxu1 %v3982_v0  ;;  %v3987_v3 = vld [vmem:[%s5776_s4 + $0x200] ss:$8 sps:$4 sm:$0xff]   ;;  %v3990_v5 = vld [vmem:[%s5776_s4 + $0x214] ss:$8 sps:$4 sm:$0xff]  }
   0x3   :  { %2529 = vmatprep.subr.bf16.mxu0 %v3984_v1  ;;  %2304 = vmatpush1.bf16.msra.mxu1 %v3986_v2  ;;  %v3992_v6 = vld [vmem:[%s5776_s4 + $0x10] ss:$8 sps:$4 sm:$0xff]   ;;  %v3994_v8 = vld [vmem:[%s5776_s4 + $0x24] ss:$8 sps:$4 sm:$0xff]   ;;  %v3998_v10 = vld [vmem:[%s5776_s4 + $0x20] ss:$8 sps:$4 sm:$0xff]  }
   0x4   :  { %2530 = vmatpush1.bf16.msra.mxu0 %v3987_v3  ;;  %2305 = vmatprep.subr.bf16.mxu1 %v3988_v4  ;;  %v3993_v7 = vld [vmem:[%s5776_s4 + $0x210] ss:$8 sps:$4 sm:$0xff]   ;;  %v3996_v9 = vld [vmem:[%s5776_s4 + $0x224] ss:$8 sps:$4 sm:$0xff]   ;;  %v3999_v11 = vld [vmem:[%s5776_s4 + $0x220] ss:$8 sps:$4 sm:$0xff]  }
   0x5   :  { %2531 = vmatprep.subr.bf16.mxu0 %v3990_v5  ;;  %v4000_v12 = vld [vmem:[%s5776_s4 + $0x34] ss:$8 sps:$4 sm:$0xff]   ;;  %v4004_v14 = vld [vmem:[%s5776_s4 + $0x30] ss:$8 sps:$4 sm:$0xff]   ;;  %v4006_v16 = vld [vmem:[%s5776_s4 + $0x44] ss:$8 sps:$4 sm:$0xff]  }
   0x6   :  { %v4002_v13 = vld [vmem:[%s5776_s4 + $0x234] ss:$8 sps:$4 sm:$0xff]   ;;  %v4005_v15 = vld [vmem:[%s5776_s4 + $0x230] ss:$8 sps:$4 sm:$0xff]   ;;  %v4008_v17 = vld [vmem:[%s5776_s4 + $0x244] ss:$8 sps:$4 sm:$0xff]  }
   0x7   :  { %2306 = vmatpush1.bf16.msra.mxu1 %v3992_v6  ;;  %v4010_v18 = vld [vmem:[%s5776_s4 + $0x40] ss:$8 sps:$4 sm:$0xff]   ;;  %v4012_v20 = vld [vmem:[%s5776_s4 + $0x54] ss:$8 sps:$4 sm:$0xff]   ;;  %v4016_v22 = vld [vmem:[%s5776_s4 + $0x50] ss:$8 sps:$4 sm:$0xff]  }
   0x8   :  { %2532 = vmatpush1.bf16.msra.mxu0 %v3993_v7  ;;  %2307 = vmatprep.subr.bf16.mxu1 %v3994_v8  ;;  %v4011_v19 = vld [vmem:[%s5776_s4 + $0x240] ss:$8 sps:$4 sm:$0xff]   ;;  %v4014_v21 = vld [vmem:[%s5776_s4 + $0x254] ss:$8 sps:$4 sm:$0xff]   ;;  %v4017_v23 = vld [vmem:[%s5776_s4 + $0x250] ss:$8 sps:$4 sm:$0xff]  }
   0x9   :  { %2533 = vmatprep.subr.bf16.mxu0 %v3996_v9  ;;  %v4018_v24 = vld [vmem:[%s5776_s4 + $0x64] ss:$8 sps:$4 sm:$0xff]   ;;  %v4022_v26 = vld [vmem:[%s5776_s4 + $0x60] ss:$8 sps:$4 sm:$0xff]   ;;  %v4024_v28 = vld [vmem:[%s5776_s4 + $0x74] ss:$8 sps:$4 sm:$0xff]  }
   0xa   :  { %v4020_v25 = vld [vmem:[%s5776_s4 + $0x264] ss:$8 sps:$4 sm:$0xff]   ;;  %v4023_v27 = vld [vmem:[%s5776_s4 + $0x260] ss:$8 sps:$4 sm:$0xff]   ;;  %v4026_v29 = vld [vmem:[%s5776_s4 + $0x274] ss:$8 sps:$4 sm:$0xff]  }
   0xb   :  { %2308 = vmatpush1.bf16.msra.mxu1 %v3998_v10  ;;  %v4028_v30 = vld [vmem:[%s5776_s4 + $0x70] ss:$8 sps:$4 sm:$0xff]   ;;  %v4030_v32 = vld [vmem:[%s5776_s4 + $0x84] ss:$8 sps:$4 sm:$0xff]   ;;  %v4034_v34 = vld [vmem:[%s5776_s4 + $0x80] ss:$8 sps:$4 sm:$0xff]  }
   0xc   :  { %2534 = vmatpush1.bf16.msra.mxu0 %v3999_v11  ;;  %2309 = vmatprep.subr.bf16.mxu1 %v4000_v12  ;;  %v4029_v31 = vld [vmem:[%s5776_s4 + $0x270] ss:$8 sps:$4 sm:$0xff]   ;;  %v4032_v33 = vld [vmem:[%s5776_s4 + $0x284] ss:$8 sps:$4 sm:$0xff]   ;;  %v4035_v35 = vld [vmem:[%s5776_s4 + $0x280] ss:$8 sps:$4 sm:$0xff]  }
   0xd   :  { %2535 = vmatprep.subr.bf16.mxu0 %v4002_v13  ;;  %v4036_v36 = vld [vmem:[%s5776_s4 + $0x94] ss:$8 sps:$4 sm:$0xff]   ;;  %v4040_v38 = vld [vmem:[%s5776_s4 + $0x90] ss:$8 sps:$4 sm:$0xff]   ;;  %v4042_v40 = vld [vmem:[%s5776_s4 + $0xa4] ss:$8 sps:$4 sm:$0xff]  }
   0xe   :  { %v4038_v37 = vld [vmem:[%s5776_s4 + $0x294] ss:$8 sps:$4 sm:$0xff]   ;;  %v4041_v39 = vld [vmem:[%s5776_s4 + $0x290] ss:$8 sps:$4 sm:$0xff]   ;;  %v4044_v41 = vld [vmem:[%s5776_s4 + $0x2a4] ss:$8 sps:$4 sm:$0xff]  }
   0xf   :  { %2310 = vmatpush1.bf16.msra.mxu1 %v4004_v14  ;;  %v4046_v42 = vld [vmem:[%s5776_s4 + $0xa0] ss:$8 sps:$4 sm:$0xff]   ;;  %v4048_v44 = vld [vmem:[%s5776_s4 + $0xb4] ss:$8 sps:$4 sm:$0xff]   ;;  %v4052_v46 = vld [vmem:[%s5776_s4 + $0xb0] ss:$8 sps:$4 sm:$0xff]  }
  0x10   :  { %2536 = vmatpush1.bf16.msra.mxu0 %v4005_v15  ;;  %2311 = vmatprep.subr.bf16.mxu1 %v4006_v16  ;;  %v4047_v43 = vld [vmem:[%s5776_s4 + $0x2a0] ss:$8 sps:$4 sm:$0xff]   ;;  %v4050_v45 = vld [vmem:[%s5776_s4 + $0x2b4] ss:$8 sps:$4 sm:$0xff]   ;;  %v4053_v47 = vld [vmem:[%s5776_s4 + $0x2b0] ss:$8 sps:$4 sm:$0xff]  }
  0x11   :  { %2537 = vmatprep.subr.bf16.mxu0 %v4008_v17  ;;  %v4054_v48 = vld [vmem:[%s5776_s4 + $0xc4] ss:$8 sps:$4 sm:$0xff]   ;;  %v4078_v50 = vld [vmem:[%s5777_s1] ss:$8 sps:$4 sm:$0xff]   ;;  %v4060_v63 = vld [vmem:[%s5776_s4 + $0xd4] ss:$8 sps:$4 sm:$0xff]  }
  0x12   :  { %v4056_v49 = vld [vmem:[%s5776_s4 + $0x2c4] ss:$8 sps:$4 sm:$0xff]   ;;  %v617_v51 = vld [vmem:[%s5778_s2] sm:$0xf]  ;;  %v619_v53 = vld [vmem:[%s5778_s2 + $0x8] sm:$0xf]  ;;  %2335 = vmatprep.mubr.bf16.mxu1 %v4078_v50 }
  0x13   :  { %2312 = vmatpush1.bf16.msra.mxu1 %v4010_v18  ;;  %v618_v52 = vld [vmem:[%s5778_s2 + $0x4] sm:$0x1]  ;;  %v620_v54 = vld [vmem:[%s5778_s2 + $0xc] sm:$0x1]  ;;  %v650_v55 = vshrl.u32 %v617_v51, 16  ;;  %v653_v56 = vshll.u32 %v617_v51, 16  ;;  %vm4631_vm2 = vmor %vm206_vm0, %vm207_vm1 }
  0x14   :  { %2538 = vmatpush1.bf16.msra.mxu0 %v4011_v19  ;;  %2313 = vmatprep.subr.bf16.mxu1 %v4012_v20  ;;  %v659_v57 = vshll.u32 %v618_v52, 16  ;;  %v664_v58 = vshrl.u32 %v619_v53, 16  ;;  %v4058_v59 = vld [vmem:[%s5776_s4 + $0xc0] ss:$8 sps:$4 sm:$0xff]   ;;  %v667_v61 = vshll.u32 %v619_v53, 16  ;;  %v673_v62 = vshll.u32 %v620_v54, 16 }
  0x15   :  { %2539 = vmatprep.subr.bf16.mxu0 %v4014_v21  ;;  %v4059_v60 = vld [vmem:[%s5776_s4 + $0x2c0] ss:$8 sps:$4 sm:$0xff]   ;;  %v652_v0 = vrot.slane %v650_v55, 4  ;;  %v655_v1 = vrot.slane %v653_v56, 5  ;;  %v4062_v3 = vld [vmem:[%s5776_s4 + $0x2d4] ss:$8 sps:$4 sm:$0xff]  }
  0x16   :  { %v666_v2 = vrot.slane %v664_v58, 4  ;;  %v669_v4 = vrot.slane %v667_v61, 5  ;;  %v661_v6 = vrot.slane %v659_v57, 5  ;;  %v675_v9 = vrot.slane %v673_v62, 5  ;;  %v4064_v10 = vld [vmem:[%s5776_s4 + $0xd0] ss:$8 sps:$4 sm:$0xff]  }
  0x17   :  { %2314 = vmatpush1.bf16.msra.mxu1 %v4016_v22  ;;  %v656_v5 = vor.u32 %v655_v1, %v652_v0  ;;  %v4065_v12 = vld [vmem:[%s5776_s4 + $0x2d0] ss:$8 sps:$4 sm:$0xff]   ;;  %v4066_v13 = vld [vmem:[%s5776_s4 + $0xe4] ss:$8 sps:$4 sm:$0xff]   ;;  %v4070_v17 = vld [vmem:[%s5776_s4 + $0xe0] ss:$8 sps:$4 sm:$0xff]  }
  0x18   :  { %2540 = vmatpush1.bf16.msra.mxu0 %v4017_v23  ;;  %2315 = vmatprep.subr.bf16.mxu1 %v4018_v24  ;;  %v670_v8 = vor.u32 %v669_v4, %v666_v2  ;;  %v4068_v15 = vld [vmem:[%s5776_s4 + $0x2e4] ss:$8 sps:$4 sm:$0xff]   ;;  %v4071_v18 = vld [vmem:[%s5776_s4 + $0x2e0] ss:$8 sps:$4 sm:$0xff]   ;;  %v4072_v20 = vld [vmem:[%s5776_s4 + $0xf4] ss:$8 sps:$4 sm:$0xff]  }
  0x19   :  { %2541 = vmatprep.subr.bf16.mxu0 %v4020_v25  ;;  %v657_v11 = vrot.slane %v656_v5, 4  ;;  %v4074_v21 = vld [vmem:[%s5776_s4 + $0x2f4] ss:$8 sps:$4 sm:$0xff]   ;;  %v621_v23 = vld [vmem:[%s5778_s2 + $0x10] sm:$0xf] }
  0x1a   :  { %v671_v14 = vrot.slane %v670_v8, 4  ;;  %v622_v24 = vld [vmem:[%s5778_s2 + $0x14] sm:$0x1]  ;;  %v623_v25 = vld [vmem:[%s5778_s2 + $0x18] sm:$0xf] }
  0x1b   :  { %2316 = vmatpush1.bf16.msra.mxu1 %v4022_v26  ;;  %v662_v16 = vsel %vm4631_vm2, %v657_v11, %v661_v6  ;;  %v624_v26 = vld [vmem:[%s5778_s2 + $0x1c] sm:$0x1]  ;;  %v4084_v50 = vld [vmem:[%s5776_s4 + $0x300] ss:$8 sps:$4 sm:$0xff]   ;;  %v4087_v55 = vld [vmem:[%s5776_s4 + $0x110] ss:$8 sps:$4 sm:$0xff]  }
  0x1c   :  { %2542 = vmatpush1.bf16.msra.mxu0 %v4023_v27  ;;  %2317 = vmatprep.subr.bf16.mxu1 %v4024_v28  ;;  %v676_v19 = vsel %vm4631_vm2, %v671_v14, %v675_v9  ;;  %v678_v27 = vshrl.u32 %v621_v23, 16  ;;  %v681_v28 = vshll.u32 %v621_v23, 16  ;;  %v4089_v52 = vld [vmem:[%s5776_s4 + $0x114] ss:$8 sps:$4 sm:$0xff]   ;;  %v4090_v56 = vld [vmem:[%s5776_s4 + $0x310] ss:$8 sps:$4 sm:$0xff]  }
  0x1d   :  { %2543 = vmatprep.subr.bf16.mxu0 %v4026_v29  ;;  %v3533_v22 = vcombine.low %v662_v16, %v676_v19  ;;  %v687_v29 = vshll.u32 %v622_v24, 16  ;;  %v4092_v53 = vld [vmem:[%s5776_s4 + $0x314] ss:$8 sps:$4 sm:$0xff]   ;;  %v4093_v57 = vld [vmem:[%s5777_s1 + $0x10] ss:$8 sps:$4 sm:$0xff]  }
  0x1e   :  { %v626_v61 = vld [vmem:[%s5778_s2 + $0x24] sm:$0x1]  ;;  %v627_v62 = vld [vmem:[%s5778_s2 + $0x28] sm:$0xf]  ;;  %v4094_v4 = vld [vmem:[%s5779_s0 + $0x10] ss:$8 sps:$4 sm:$0xff]  }
  0x1f   :  { %2318 = vmatpush1.bf16.msra.mxu1 %v4028_v30  ;;  %v692_v30 = vshrl.u32 %v623_v25, 16  ;;  %2561 = vmatprep.mubr.bf16.mxu0 %v3533_v22  ;;  %v715_v2 = vshll.u32 %v626_v61, 16  ;;  %v4098_v5 = vld [vmem:[%s5780_s3 + $0x10] ss:$8 sps:$4 sm:$0xff]   ;;  %v4101_v6 = vld [vmem:[%s5776_s4 + $0x324] ss:$8 sps:$4 sm:$0xff]  }
  0x20   :  { %2544 = vmatpush1.bf16.msra.mxu0 %v4029_v31  ;;  %2319 = vmatprep.subr.bf16.mxu1 %v4030_v32  ;;  %v695_v31 = vshll.u32 %v623_v25, 16  ;;  %v701_v32 = vshll.u32 %v624_v26, 16  ;;  %v723_v8 = vshll.u32 %v627_v62, 16  ;;  %v4099_v14 = vld [vmem:[%s5776_s4 + $0x320] ss:$8 sps:$4 sm:$0xff]  }
  0x21   :  { %2545 = vmatprep.subr.bf16.mxu0 %v4032_v33  ;;  %v4076_v33 = vld [vmem:[%s5776_s4 + $0xf0] ss:$8 sps:$4 sm:$0xff]   ;;  %v4107_v19 = vld [vmem:[%s5776_s4 + $0x334] ss:$8 sps:$4 sm:$0xff]   ;;  %v4108_v22 = vld [vmem:[%s5777_s1 + $0x20] ss:$8 sps:$4 sm:$0xff]  }
  0x22   :  { %v725_v16 = vrot.slane %v723_v8, 5  ;;  %v4102_v24 = vld [vmem:[%s5776_s4 + $0x130] ss:$8 sps:$4 sm:$0xff]   ;;  %v4127_v61 = vld [vmem:[%s5776_s4 + $0x164] ss:$8 sps:$4 sm:$0xff]  }
  0x23   :  { %2320 = vmatpush1.bf16.msra.mxu1 %v4034_v34  ;;  %v680_v34 = vrot.slane %v678_v27, 4  ;;  %v4105_v26 = vld [vmem:[%s5776_s4 + $0x330] ss:$8 sps:$4 sm:$0xff]  }
  0x24   :  { %2546 = vmatpush1.bf16.msra.mxu0 %v4035_v35  ;;  %2321 = vmatprep.subr.bf16.mxu1 %v4036_v36  ;;  %v683_v35 = vrot.slane %v681_v28, 5  ;;  %v4077_v36 = vld [vmem:[%s5776_s4 + $0x2f0] ss:$8 sps:$4 sm:$0xff]   ;;  %v4112_v28 = vld [vmem:[%s5776_s4 + $0x144] ss:$8 sps:$4 sm:$0xff]  }
  0x25   :  { %2547 = vmatprep.subr.bf16.mxu0 %v4038_v37  ;;  %v694_v37 = vrot.slane %v692_v30, 4  ;;  %v4109_v30 = vld [vmem:[%s5779_s0 + $0x20] ss:$8 sps:$4 sm:$0xff]  }
  0x27   :  { %2322 = vmatpush1.bf16.msra.mxu1 %v4040_v38  ;;  %v697_v38 = vrot.slane %v695_v31, 5  ;;  %v4113_v31 = vld [vmem:[%s5780_s3 + $0x20] ss:$8 sps:$4 sm:$0xff]  }
  0x28   :  { %2548 = vmatpush1.bf16.msra.mxu0 %v4041_v39  ;;  %2323 = vmatprep.subr.bf16.mxu1 %v4042_v40  ;;  %v4082_v39 = vld [vmem:[%s5776_s4 + $0x104] ss:$8 sps:$4 sm:$0xff]   ;;  %v684_v40 = vor.u32 %v683_v35, %v680_v34  ;;  %v4110_v34 = vld [vmem:[%s5776_s4 + $0x140] ss:$8 sps:$4 sm:$0xff]  }
  0x29   :  { %2549 = vmatprep.subr.bf16.mxu0 %v4044_v41  ;;  %v689_v41 = vrot.slane %v687_v29, 5  ;;  %v4114_v35 = vld [vmem:[%s5776_s4 + $0x340] ss:$8 sps:$4 sm:$0xff]  }
  0x2b   :  { %2324 = vmatpush1.bf16.msra.mxu1 %v4046_v42  ;;  %v4086_v42 = vld [vmem:[%s5776_s4 + $0x304] ss:$8 sps:$4 sm:$0xff]  }
  0x2c   :  { %2550 = vmatpush1.bf16.msra.mxu0 %v4047_v43  ;;  %2325 = vmatprep.subr.bf16.mxu1 %v4048_v44  ;;  %v698_v43 = vor.u32 %v697_v38, %v694_v37  ;;  %v703_v44 = vrot.slane %v701_v32, 5  ;;  %v4116_v32 = vld [vmem:[%s5776_s4 + $0x344] ss:$8 sps:$4 sm:$0xff]   ;;  %v630_v37 = vld [vmem:[%s5778_s2 + $0x34] sm:$0x1] }
  0x2d   :  { %2551 = vmatprep.subr.bf16.mxu0 %v4050_v45  ;;  %v4079_v45 = vld [vmem:[%s5779_s0] ss:$8 sps:$4 sm:$0xff]   ;;  %v631_v38 = vld [vmem:[%s5778_s2 + $0x38] sm:$0xf] }
  0x2f   :  { %2326 = vmatpush1.bf16.msra.mxu1 %v4052_v46  ;;  %v4080_v46 = vld [vmem:[%s5776_s4 + $0x100] ss:$8 sps:$4 sm:$0xff]  }
  0x30   :  { %2552 = vmatpush1.bf16.msra.mxu0 %v4053_v47  ;;  %2327 = vmatprep.subr.bf16.mxu1 %v4054_v48  ;;  %v685_v47 = vrot.slane %v684_v40, 4  ;;  %v4083_v48 = vld [vmem:[%s5780_s3] ss:$8 sps:$4 sm:$0xff]   ;;  %v632_v40 = vld [vmem:[%s5778_s2 + $0x3c] sm:$0x1] }
  0x31   :  { %2553 = vmatprep.subr.bf16.mxu0 %v4056_v49  ;;  %v699_v49 = vrot.slane %v698_v43, 4  ;;  %v743_v43 = vshll.u32 %v630_v37, 16  ;;  %v4144_v37 = vld [vmem:[%s5776_s4 + $0x380] ss:$8 sps:$4 sm:$0xff]  }
  0x32   :  { %v690_v51 = vsel %vm4631_vm2, %v685_v47, %v689_v41  ;;  %v4122_v47 = vld [vmem:[%s5776_s4 + $0x354] ss:$8 sps:$4 sm:$0xff]  }
  0x33   :  { %2328 = vmatpush1.bf16.msra.mxu1 %v4058_v59  ;;  %v704_v54 = vsel %vm4631_vm2, %v699_v49, %v703_v44  ;;  %v625_v59 = vld [vmem:[%s5778_s2 + $0x20] sm:$0xf]  ;;  %v748_v44 = vshrl.u32 %v631_v38, 16 }
  0x34   :  { %2554 = vmatpush1.bf16.msra.mxu0 %v4059_v60  ;;  %2329 = vmatprep.subr.bf16.mxu1 %v4060_v63  ;;  %v3534_v58 = vcombine.low %v690_v51, %v704_v54  ;;  %v4097_v60 = vld [vmem:[%s5776_s4 + $0x124] ss:$8 sps:$4 sm:$0xff]   ;;  %v706_v0 = vshrl.u32 %v625_v59, 16  ;;  %v709_v1 = vshll.u32 %v625_v59, 16  ;;  %v4117_v51 = vld [vmem:[%s5776_s4 + $0x150] ss:$8 sps:$4 sm:$0xff]  }
  0x35   :  { %2555 = vmatprep.subr.bf16.mxu0 %v4062_v3  ;;  %v628_v63 = vld [vmem:[%s5778_s2 + $0x2c] sm:$0x1]  ;;  %v720_v3 = vshrl.u32 %v627_v62, 16 }
  0x36   :  { %v729_v9 = vshll.u32 %v628_v63, 16  ;;  %v708_v11 = vrot.slane %v706_v0, 4  ;;  %v4131_v62 = vld [vmem:[%s5776_s4 + $0x364] ss:$8 sps:$4 sm:$0xff]   ;;  %v4125_v0 = vld [vmem:[%s5776_s4 + $0x160] ss:$8 sps:$4 sm:$0xff]  }
  0x37   :  { %2330 = vmatpush1.bf16.msra.mxu1 %v4064_v10  ;;  %v4095_v10 = vld [vmem:[%s5776_s4 + $0x120] ss:$8 sps:$4 sm:$0xff]  }
  0x38   :  { %2556 = vmatpush1.bf16.msra.mxu0 %v4065_v12  ;;  %2331 = vmatprep.subr.bf16.mxu1 %v4066_v13  ;;  %v711_v12 = vrot.slane %v709_v1, 5  ;;  %v722_v13 = vrot.slane %v720_v3, 4  ;;  %v4128_v1 = vld [vmem:[%s5780_s3 + $0x30] ss:$8 sps:$4 sm:$0xff]   ;;  %v4129_v3 = vld [vmem:[%s5776_s4 + $0x360] ss:$8 sps:$4 sm:$0xff]  }
  0x39   :  { %2557 = vmatprep.subr.bf16.mxu0 %v4068_v15  ;;  %v4104_v15 = vld [vmem:[%s5776_s4 + $0x134] ss:$8 sps:$4 sm:$0xff]  }
  0x3b   :  { %2332 = vmatpush1.bf16.msra.mxu1 %v4070_v17  ;;  %v712_v17 = vor.u32 %v711_v12, %v708_v11  ;;  %v634_v11 = vld [vmem:[%s5778_s2 + $0x4c] sm:$0x1]  ;;  %v635_v12 = vld [vmem:[%s5778_s2 + $0x50] sm:$0xf] }
  0x3c   :  { %2558 = vmatpush1.bf16.msra.mxu0 %v4071_v18  ;;  %2333 = vmatprep.subr.bf16.mxu1 %v4072_v20  ;;  %v717_v18 = vrot.slane %v715_v2, 5  ;;  %v726_v20 = vor.u32 %v725_v16, %v722_v13  ;;  %v636_v13 = vld [vmem:[%s5778_s2 + $0x54] sm:$0x1]  ;;  %v771_v16 = vshll.u32 %v634_v11, 16 }
  0x3d   :  { %2559 = vmatprep.subr.bf16.mxu0 %v4074_v21  ;;  %v731_v21 = vrot.slane %v729_v9, 5  ;;  %v713_v23 = vrot.slane %v712_v17, 4  ;;  %v4138_v9 = vld [vmem:[%s5777_s1 + $0x48] ss:$8 sps:$4 sm:$0xff]   ;;  %v776_v17 = vshrl.u32 %v635_v12, 16 }
  0x3e   :  { %v727_v25 = vrot.slane %v726_v20, 4  ;;  %v4132_v20 = vld [vmem:[%s5776_s4 + $0x170] ss:$8 sps:$4 sm:$0xff]  }
  0x3f   :  { %2334 = vmatpush1.bf16.msra.mxu1 %v4076_v33  ;;  %v718_v27 = vsel %vm4631_vm2, %v713_v23, %v717_v18  ;;  %v779_v18 = vshll.u32 %v635_v12, 16  ;;  %v4135_v23 = vld [vmem:[%s5776_s4 + $0x370] ss:$8 sps:$4 sm:$0xff]  }
  0x40   :  { %2560 = vmatpush1.bf16.msra.mxu0 %v4077_v36  ;;  %2416 = vmatprep.subr.bf16.mxu1 %v4082_v39  ;;  %v732_v29 = vsel %vm4631_vm2, %v727_v25, %v731_v21  ;;  %v629_v36 = vld [vmem:[%s5778_s2 + $0x30] sm:$0xf]  ;;  %v4119_v39 = vld [vmem:[%s5776_s4 + $0x154] ss:$8 sps:$4 sm:$0xff]  }
  0x41   :  { %2642 = vmatprep.subr.bf16.mxu0 %v4086_v42  ;;  %v3535_v33 = vcombine.low %v718_v27, %v732_v29  ;;  %v734_v41 = vshrl.u32 %v629_v36, 16  ;;  %v737_v42 = vshll.u32 %v629_v36, 16  ;;  %v781_v25 = vrot.slane %v779_v18, 5  ;;  %v4143_v36 = vld [vmem:[%s5780_s3 + $0x48] ss:$8 sps:$4 sm:$0xff]  }
  0x42   :  { %2336 = vmatmul.mubr.bf16.vlgmr.msra.gmra.mrb[0].mxu1 %v4079_v45  ;;  %v751_v45 = vshll.u32 %v631_v38, 16  ;;  %v773_v27 = vrot.slane %v771_v16, 5  ;;  %v4165_v12 = vld [vmem:[%s5776_s4 + $0x3b0] ss:$8 sps:$4 sm:$0xff]   ;;  %v642_v18 = vld [vmem:[%s5778_s2 + $0x6c] sm:$0x1] }
  0x43   :  { %2562 = vmatmul.mubr.bf16.vlgmr.msra.gmra.mrb[0].mxu0 %v4083_v48  ;;  %2417 = vmatpush1.bf16.msra.mxu1 %v4080_v46  ;;  %v757_v46 = vshll.u32 %v632_v40, 16  ;;  %v736_v48 = vrot.slane %v734_v41, 4  ;;  %v739_v49 = vrot.slane %v737_v42, 5  ;;  %v4149_v40 = vld [vmem:[%s5776_s4 + $0x194] ss:$8 sps:$4 sm:$0xff]  }
  0x44   :  { %2643 = vmatpush1.bf16.msra.mxu0 %v4084_v50  ;;  %2418 = vmatprep.subr.bf16.mxu1 %v4089_v52  ;;  %v750_v50 = vrot.slane %v748_v44, 4  ;;  %v4123_v52 = vld [vmem:[%s5777_s1 + $0x30] ss:$8 sps:$4 sm:$0xff]  }
  0x45   :  { %2644 = vmatprep.subr.bf16.mxu0 %v4092_v53  ;;  %2345 = vmatprep.mubr.bf16.mxu1 %v4093_v57  ;;  %v753_v53 = vrot.slane %v751_v45, 5  ;;  %v740_v54 = vor.u32 %v739_v49, %v736_v48  ;;  %v4150_v42 = vld [vmem:[%s5776_s4 + $0x390] ss:$8 sps:$4 sm:$0xff]   ;;  %v639_v48 = vld [vmem:[%s5778_s2 + $0x60] sm:$0xf] }
  0x46   :  { %2571 = vmatprep.mubr.bf16.mxu0 %v3534_v58  ;;  %v759_v58 = vrot.slane %v757_v46, 5  ;;  %v4153_v45 = vld [vmem:[%s5777_s1 + $0x58] ss:$8 sps:$4 sm:$0xff]   ;;  %v640_v49 = vld [vmem:[%s5778_s2 + $0x64] sm:$0x1] }
  0x47   :  { %2419 = vmatpush1.bf16.msra.mxu1 %v4087_v55  ;;  %v745_v55 = vrot.slane %v743_v43, 5  ;;  %v754_v57 = vor.u32 %v753_v53, %v750_v50  ;;  %v741_v59 = vrot.slane %v740_v54, 4  ;;  %v4152_v43 = vld [vmem:[%s5776_s4 + $0x394] ss:$8 sps:$4 sm:$0xff]   ;;  %v637_v46 = vld [vmem:[%s5778_s2 + $0x58] sm:$0xf] }
  0x48   :  { %2645 = vmatpush1.bf16.msra.mxu0 %v4090_v56  ;;  %2420 = vmatprep.subr.bf16.mxu1 %v4097_v60  ;;  %v4120_v56 = vld [vmem:[%s5776_s4 + $0x350] ss:$8 sps:$4 sm:$0xff]   ;;  %v790_v50 = vshrl.u32 %v637_v46, 16  ;;  %v804_v53 = vshrl.u32 %v639_v48, 16  ;;  %v807_v54 = vshll.u32 %v639_v48, 16 }
  0x49   :  { %2646 = vmatprep.subr.bf16.mxu0 %v4101_v6  ;;  %v4124_v60 = vld [vmem:[%s5779_s0 + $0x30] ss:$8 sps:$4 sm:$0xff]   ;;  %v755_v63 = vrot.slane %v754_v57, 4  ;;  %v746_v2 = vsel %vm4631_vm2, %v741_v59, %v745_v55  ;;  %v4137_v6 = vld [vmem:[%s5776_s4 + $0x374] ss:$8 sps:$4 sm:$0xff]   ;;  %v813_v55 = vshll.u32 %v640_v49, 16 }
  0x4a   :  { %2346 = vmatmul.mubr.bf16.gmra.mrb[4].mxu1 %v4094_v4  ;;  %v4134_v4 = vld [vmem:[%s5776_s4 + $0x174] ss:$8 sps:$4 sm:$0xff]   ;;  %v792_v57 = vrot.slane %v790_v50, 4  ;;  %v806_v59 = vrot.slane %v804_v53, 4  ;;  %v4183_v50 = vld [vmem:[%s5777_s1 + $0x78] ss:$8 sps:$4 sm:$0xff]  }
  0x4b   :  { %2572 = vmatmul.mubr.bf16.gmra.mrb[4].mxu0 %v4098_v5  ;;  %2421 = vmatpush1.bf16.msra.mxu1 %v4095_v10  ;;  %v760_v5 = vsel %vm4631_vm2, %v755_v63, %v759_v58  ;;  %v633_v10 = vld [vmem:[%s5778_s2 + $0x48] sm:$0xf]  ;;  %v4182_v48 = vld [vmem:[%s5776_s4 + $0x3d4] ss:$8 sps:$4 sm:$0xff]   ;;  %v647_v53 = vld [vmem:[%s5778_s2 + $0x80] sm:$0xf] }
  0x4c   :  { %2647 = vmatpush1.bf16.msra.mxu0 %v4099_v14  ;;  %2422 = vmatprep.subr.bf16.mxu1 %v4104_v15  ;;  %v3536_v8 = vcombine.low %v746_v2, %v760_v5  ;;  %v762_v14 = vshrl.u32 %v633_v10, 16  ;;  %v765_v15 = vshll.u32 %v633_v10, 16  ;;  %v815_v2 = vrot.slane %v813_v55, 5  ;;  %v4161_v5 = vld [vmem:[%s5776_s4 + $0x3a4] ss:$8 sps:$4 sm:$0xff]  }
  0x4d   :  { %2648 = vmatprep.subr.bf16.mxu0 %v4107_v19  ;;  %2355 = vmatprep.mubr.bf16.mxu1 %v4108_v22  ;;  %v785_v19 = vshll.u32 %v636_v13, 16  ;;  %v4164_v10 = vld [vmem:[%s5776_s4 + $0x1b4] ss:$8 sps:$4 sm:$0xff]  }
  0x4e   :  { %2581 = vmatprep.mubr.bf16.mxu0 %v3535_v33  ;;  %v764_v21 = vrot.slane %v762_v14, 4  ;;  %v767_v22 = vrot.slane %v765_v15, 5  ;;  %v4140_v33 = vld [vmem:[%s5776_s4 + $0x180] ss:$8 sps:$4 sm:$0xff]   ;;  %v4167_v13 = vld [vmem:[%s5776_s4 + $0x3b4] ss:$8 sps:$4 sm:$0xff]  }
  0x4f   :  { %2423 = vmatpush1.bf16.msra.mxu1 %v4102_v24  ;;  %v778_v24 = vrot.slane %v776_v17, 4  ;;  %v4168_v15 = vld [vmem:[%s5777_s1 + $0x68] ss:$8 sps:$4 sm:$0xff]  }
  0x50   :  { %2649 = vmatpush1.bf16.msra.mxu0 %v4105_v26  ;;  %2424 = vmatprep.subr.bf16.mxu1 %v4112_v28  ;;  %v768_v26 = vor.u32 %v767_v22, %v764_v21  ;;  %v4142_v28 = vld [vmem:[%s5776_s4 + $0x184] ss:$8 sps:$4 sm:$0xff]   ;;  %v641_v17 = vld [vmem:[%s5778_s2 + $0x68] sm:$0xf] }
  0x51   :  { %2650 = vmatprep.subr.bf16.mxu0 %v4116_v32  ;;  %v782_v29 = vor.u32 %v781_v25, %v778_v24  ;;  %v818_v21 = vshrl.u32 %v641_v17, 16  ;;  %v821_v22 = vshll.u32 %v641_v17, 16 }
  0x52   :  { %2356 = vmatmul.mubr.bf16.gmra.mrb[8].mxu1 %v4109_v30  ;;  %v787_v30 = vrot.slane %v785_v19, 5  ;;  %v769_v32 = vrot.slane %v768_v26, 4  ;;  %v643_v19 = vld [vmem:[%s5778_s2 + $0x70] sm:$0xf] }
  0x53   :  { %2582 = vmatmul.mubr.bf16.gmra.mrb[8].mxu0 %v4113_v31  ;;  %2425 = vmatpush1.bf16.msra.mxu1 %v4110_v34  ;;  %v4139_v31 = vld [vmem:[%s5779_s0 + $0x48] ss:$8 sps:$4 sm:$0xff]   ;;  %v4146_v34 = vld [vmem:[%s5776_s4 + $0x384] ss:$8 sps:$4 sm:$0xff]   ;;  %v832_v24 = vshrl.u32 %v643_v19, 16  ;;  %v835_v25 = vshll.u32 %v643_v19, 16 }
  0x54   :  { %2651 = vmatpush1.bf16.msra.mxu0 %v4114_v35  ;;  %2426 = vmatprep.subr.bf16.mxu1 %v4119_v39  ;;  %v783_v35 = vrot.slane %v782_v29, 4  ;;  %v774_v38 = vsel %vm4631_vm2, %v769_v32, %v773_v27  ;;  %v4147_v39 = vld [vmem:[%s5776_s4 + $0x190] ss:$8 sps:$4 sm:$0xff]   ;;  %v820_v27 = vrot.slane %v818_v21, 4  ;;  %v4197_v19 = vld [vmem:[%s5776_s4 + $0x3f4] ss:$8 sps:$4 sm:$0xff]  }
  0x55   :  { %2652 = vmatprep.subr.bf16.mxu0 %v4122_v47  ;;  %2365 = vmatprep.mubr.bf16.mxu1 %v4123_v52  ;;  %v638_v47 = vld [vmem:[%s5778_s2 + $0x5c] sm:$0x1]  ;;  %v834_v29 = vrot.slane %v832_v24, 4  ;;  %v837_v32 = vrot.slane %v835_v25, 5  ;;  %v4198_v21 = vld [vmem:[%s5778_s2] ss:$8 sps:$4 sm:$0xff]  }
  0x56   :  { %2591 = vmatprep.mubr.bf16.mxu0 %v3536_v8  ;;  %v788_v41 = vsel %vm4631_vm2, %v783_v35, %v787_v30  ;;  %v799_v52 = vshll.u32 %v638_v47, 16  ;;  %v4158_v8 = vld [vmem:[%s5780_s3 + $0x58] ss:$8 sps:$4 sm:$0xff]   ;;  %v4169_v30 = vld [vmem:[%s5779_s0 + $0x68] ss:$8 sps:$4 sm:$0xff]  }
  0x57   :  { %2427 = vmatpush1.bf16.msra.mxu1 %v4117_v51  ;;  %v3537_v44 = vcombine.low %v774_v38, %v788_v41  ;;  %v793_v51 = vshll.u32 %v637_v46, 16  ;;  %v4172_v35 = vld [vmem:[%s5776_s4 + $0x1c4] ss:$8 sps:$4 sm:$0xff]   ;;  %v4180_v46 = vld [vmem:[%s5776_s4 + $0x3d0] ss:$8 sps:$4 sm:$0xff]  }
  0x58   :  { %2653 = vmatpush1.bf16.msra.mxu0 %v4120_v56  ;;  %2428 = vmatprep.subr.bf16.mxu1 %v4127_v61  ;;  %v4154_v56 = vld [vmem:[%s5779_s0 + $0x58] ss:$8 sps:$4 sm:$0xff]   ;;  %v175_v24 = vld [vmem:[%s5779_s0 + $0x4] sm:$0x1]  ;;  %v176_v25 = vld [vmem:[%s5779_s0 + $0x8] sm:$0xf] }
  0x59   :  { %2654 = vmatprep.subr.bf16.mxu0 %v4131_v62  ;;  %v795_v58 = vrot.slane %v793_v51, 5  ;;  %v4155_v61 = vld [vmem:[%s5776_s4 + $0x1a0] ss:$8 sps:$4 sm:$0xff]   ;;  %v4157_v62 = vld [vmem:[%s5776_s4 + $0x1a4] ss:$8 sps:$4 sm:$0xff]  }
  0x5a   :  { %2366 = vmatmul.mubr.bf16.gmra.mrb[12].mxu1 %v4124_v60  ;;  %v809_v60 = vrot.slane %v807_v54, 5  ;;  %v645_v51 = vld [vmem:[%s5778_s2 + $0x78] sm:$0xf]  ;;  %v648_v54 = vld [vmem:[%s5778_s2 + $0x84] sm:$0x1] }
  0x5b   :  { %2592 = vmatmul.mubr.bf16.gmra.mrb[12].mxu0 %v4128_v1  ;;  %2429 = vmatpush1.bf16.msra.mxu1 %v4125_v0  ;;  %v796_v63 = vor.u32 %v795_v58, %v792_v57  ;;  %v801_v0 = vrot.slane %v799_v52, 5  ;;  %v646_v52 = vld [vmem:[%s5778_s2 + $0x7c] sm:$0x1]  ;;  %v846_v55 = vshrl.u32 %v645_v51, 16  ;;  %v860_v58 = vshrl.u32 %v647_v53, 16 }
  0x5c   :  { %2655 = vmatpush1.bf16.msra.mxu0 %v4129_v3  ;;  %2430 = vmatprep.subr.bf16.mxu1 %v4134_v4  ;;  %v810_v1 = vor.u32 %v809_v60, %v806_v59  ;;  %v4159_v3 = vld [vmem:[%s5776_s4 + $0x3a0] ss:$8 sps:$4 sm:$0xff]   ;;  %v855_v57 = vshll.u32 %v646_v52, 16  ;;  %v863_v59 = vshll.u32 %v647_v53, 16  ;;  %v869_v60 = vshll.u32 %v648_v54, 16 }
  0x5d   :  { %2656 = vmatprep.subr.bf16.mxu0 %v4137_v6  ;;  %2375 = vmatprep.mubr.bf16.mxu1 %v4138_v9  ;;  %v797_v4 = vrot.slane %v796_v63, 4  ;;  %v4162_v9 = vld [vmem:[%s5776_s4 + $0x1b0] ss:$8 sps:$4 sm:$0xff]   ;;  %v179_v52 = vld [vmem:[%s5779_s0 + $0x14] sm:$0x1] }
  0x5e   :  { %2601 = vmatprep.mubr.bf16.mxu0 %v3537_v44  ;;  %v811_v6 = vrot.slane %v810_v1, 4  ;;  %v4179_v44 = vld [vmem:[%s5776_s4 + $0x1d4] ss:$8 sps:$4 sm:$0xff]   ;;  %v4184_v63 = vld [vmem:[%s5779_s0 + $0x78] ss:$8 sps:$4 sm:$0xff]   ;;  %v862_v1 = vrot.slane %v860_v58, 4 }
  0x5f   :  { %2431 = vmatpush1.bf16.msra.mxu1 %v4132_v20  ;;  %v802_v11 = vsel %vm4631_vm2, %v797_v4, %v801_v0  ;;  %v644_v20 = vld [vmem:[%s5778_s2 + $0x74] sm:$0x1]  ;;  %v857_v0 = vrot.slane %v855_v57, 5  ;;  %v4185_v4 = vld [vmem:[%s5776_s4 + $0x1e0] ss:$8 sps:$4 sm:$0xff]   ;;  %v247_v58 = vshll.u32 %v179_v52, 16 }
  0x60   :  { %2657 = vmatpush1.bf16.msra.mxu0 %v4135_v23  ;;  %2432 = vmatprep.subr.bf16.mxu1 %v4142_v28  ;;  %v816_v14 = vsel %vm4631_vm2, %v811_v6, %v815_v2  ;;  %v827_v23 = vshll.u32 %v642_v18, 16  ;;  %v841_v26 = vshll.u32 %v644_v20, 16  ;;  %v823_v28 = vrot.slane %v821_v22, 5  ;;  %v4195_v18 = vld [vmem:[%s5776_s4 + $0x3f0] ss:$8 sps:$4 sm:$0xff]  }
  0x61   :  { %2658 = vmatprep.subr.bf16.mxu0 %v4146_v34  ;;  %v3538_v16 = vcombine.low %v802_v11, %v816_v14  ;;  %v865_v2 = vrot.slane %v863_v59, 5  ;;  %v4191_v11 = vld [vmem:[%s5776_s4 + $0x3e4] ss:$8 sps:$4 sm:$0xff]   ;;  %v4192_v14 = vld [vmem:[%s5776_s4 + $0x1f0] ss:$8 sps:$4 sm:$0xff]  }
  0x62   :  { %2376 = vmatmul.mubr.bf16.gmra.mrb[16].mxu1 %v4139_v31  ;;  %v829_v31 = vrot.slane %v827_v23, 5  ;;  %v824_v34 = vor.u32 %v823_v28, %v820_v27  ;;  %v4199_v22 = vld [vmem:[%s5777_s1 + $0x8] ss:$8 sps:$4 sm:$0xff]   ;;  %v174_v23 = vld [vmem:[%s5779_s0] sm:$0xf] }
  0x63   :  { %2433 = vmatpush1.bf16.msra.mxu1 %v4140_v33  ;;  %2602 = vmatmul.mubr.bf16.gmra.mrb[16].mxu0 %v4143_v36  ;;  %v4170_v33 = vld [vmem:[%s5776_s4 + $0x1c0] ss:$8 sps:$4 sm:$0xff]   ;;  %v838_v36 = vor.u32 %v837_v32, %v834_v29  ;;  %v866_v6 = vor.u32 %v865_v2, %v862_v1  ;;  %v210_v27 = vshrl.u32 %v174_v23, 16  ;;  %v213_v28 = vshll.u32 %v174_v23, 16  ;;  %v180_v53 = vld [vmem:[%s5779_s0 + $0x18] sm:$0xf] }
  0x64   :  { %2659 = vmatpush1.bf16.msra.mxu0 %v4144_v37  ;;  %2434 = vmatprep.subr.bf16.mxu1 %v4149_v40  ;;  %v843_v37 = vrot.slane %v841_v26, 5  ;;  %v825_v38 = vrot.slane %v824_v34, 4  ;;  %v4176_v40 = vld [vmem:[%s5776_s4 + $0x3c4] ss:$8 sps:$4 sm:$0xff]   ;;  %v219_v29 = vshll.u32 %v175_v24, 16  ;;  %v249_v1 = vrot.slane %v247_v58, 5 }
  0x65   :  { %2660 = vmatprep.subr.bf16.mxu0 %v4152_v43  ;;  %2385 = vmatprep.mubr.bf16.mxu1 %v4153_v45  ;;  %v839_v41 = vrot.slane %v838_v36, 4  ;;  %v4177_v43 = vld [vmem:[%s5776_s4 + $0x1d0] ss:$8 sps:$4 sm:$0xff]   ;;  %v177_v26 = vld [vmem:[%s5779_s0 + $0xc] sm:$0x1]  ;;  %v215_v34 = vrot.slane %v213_v28, 5 }
  0x66   :  { %2611 = vmatprep.mubr.bf16.mxu0 %v3538_v16  ;;  %v830_v45 = vsel %vm4631_vm2, %v825_v38, %v829_v31  ;;  %v4194_v16 = vld [vmem:[%s5776_s4 + $0x1f4] ss:$8 sps:$4 sm:$0xff]   ;;  %v227_v31 = vshll.u32 %v176_v25, 16  ;;  %v233_v32 = vshll.u32 %v177_v26, 16  ;;  %v4203_v38 = vld [vmem:[%s5776_s4 + $0x404] ss:$8 sps:$4 sm:$0xff]  }
  0x67   :  { %2435 = vmatpush1.bf16.msra.mxu1 %v4147_v39  ;;  %v4174_v39 = vld [vmem:[%s5776_s4 + $0x3c0] ss:$8 sps:$4 sm:$0xff]   ;;  %v844_v47 = vsel %vm4631_vm2, %v839_v41, %v843_v37  ;;  %v189_v52 = vld [vmem:[%s5779_s0 + $0x3c] sm:$0x1] }
  0x68   :  { %2661 = vmatpush1.bf16.msra.mxu0 %v4150_v42  ;;  %2436 = vmatprep.subr.bf16.mxu1 %v4157_v62  ;;  %v4173_v42 = vld [vmem:[%s5780_s3 + $0x68] ss:$8 sps:$4 sm:$0xff]   ;;  %v3539_v49 = vcombine.low %v830_v45, %v844_v47  ;;  %v229_v36 = vrot.slane %v227_v31, 5  ;;  %v235_v41 = vrot.slane %v233_v32, 5 }
  0x69   :  { %2662 = vmatprep.subr.bf16.mxu0 %v4161_v5  ;;  %v4187_v5 = vld [vmem:[%s5776_s4 + $0x1e4] ss:$8 sps:$4 sm:$0xff]   ;;  %v4200_v37 = vld [vmem:[%s5779_s0 + $0x8] ss:$8 sps:$4 sm:$0xff]  }
  0x6a   :  { %2386 = vmatmul.mubr.bf16.gmra.mrb[20].mxu1 %v4154_v56  ;;  %v849_v56 = vshll.u32 %v645_v51, 16  ;;  %v4204_v47 = vld [vmem:[%s5781_s6] ss:$8 sps:$4 sm:$0xff]   ;;  %v178_v51 = vld [vmem:[%s5779_s0 + $0x10] sm:$0xf] }
  0x6b   :  { %2437 = vmatpush1.bf16.msra.mxu1 %v4155_v61  ;;  %2395 = vmatprep.mubr.bf16.mxu1 %v4168_v15  ;;  %v848_v61 = vrot.slane %v846_v55, 4  ;;  %v181_v55 = vld [vmem:[%s5779_s0 + $0x1c] sm:$0x1]  ;;  %v241_v57 = vshll.u32 %v178_v51, 16 }
  0x6c   :  { %2663 = vmatpush1.bf16.msra.mxu0 %v4159_v3  ;;  %2438 = vmatprep.subr.bf16.mxu1 %v4164_v10  ;;  %v851_v62 = vrot.slane %v849_v56, 5  ;;  %v4189_v10 = vld [vmem:[%s5776_s4 + $0x3e0] ss:$8 sps:$4 sm:$0xff]   ;;  %v238_v56 = vshrl.u32 %v178_v51, 16 }
  0x6d   :  { %2664 = vmatprep.subr.bf16.mxu0 %v4167_v13  ;;  %2612 = vmatmul.mubr.bf16.gmra.mrb[20].mxu0 %v4158_v8  ;;  %v871_v8 = vrot.slane %v869_v60, 5  ;;  %v4188_v13 = vld [vmem:[%s5780_s3 + $0x78] ss:$8 sps:$4 sm:$0xff]   ;;  %v252_v60 = vshrl.u32 %v180_v53, 16 }
  0x6e   :  { %2621 = vmatprep.mubr.bf16.mxu0 %v3539_v49  ;;  %v852_v3 = vor.u32 %v851_v62, %v848_v61  ;;  %v4208_v49 = vld [vmem:[%s5777_s1 + $0x18] ss:$8 sps:$4 sm:$0xff]   ;;  %v255_v61 = vshll.u32 %v180_v53, 16  ;;  %v261_v62 = vshll.u32 %v181_v55, 16 }
  0x6f   :  { %2439 = vmatpush1.bf16.msra.mxu1 %v4162_v9  ;;  %v254_v2 = vrot.slane %v252_v60, 4 }
  0x70   :  { %2665 = vmatpush1.bf16.msra.mxu0 %v4165_v12  ;;  %2440 = vmatprep.subr.bf16.mxu1 %v4172_v35  ;;  %v853_v9 = vrot.slane %v852_v3, 4  ;;  %v867_v12 = vrot.slane %v866_v6, 4  ;;  %v257_v3 = vrot.slane %v255_v61, 5 }
  0x71   :  { %2666 = vmatprep.subr.bf16.mxu0 %v4176_v40  ;;  %v221_v40 = vrot.slane %v219_v29, 5 }
  0x72   :  { %2396 = vmatmul.mubr.bf16.gmra.mrb[24].mxu1 %v4169_v30  ;;  %v858_v15 = vsel %vm4631_vm2, %v853_v9, %v857_v0  ;;  %v872_v17 = vsel %vm4631_vm2, %v867_v12, %v871_v8  ;;  %v224_v30 = vshrl.u32 %v176_v25, 16  ;;  %v243_v0 = vrot.slane %v241_v57, 5  ;;  %v4210_v8 = vld [vmem:[%s5776_s4 + $0x410] ss:$8 sps:$4 sm:$0xff]   ;;  %v4212_v9 = vld [vmem:[%s5776_s4 + $0x414] ss:$8 sps:$4 sm:$0xff]  }
  0x73   :  { %2441 = vmatpush1.bf16.msra.mxu1 %v4170_v33  ;;  %2405 = vmatprep.mubr.bf16.mxu1 %v4183_v50  ;;  %v3540_v20 = vcombine.low %v858_v15, %v872_v17  ;;  %v212_v33 = vrot.slane %v210_v27, 4  ;;  %v4215_v12 = vld [vmem:[%s5781_s6 + $0x14] ss:$8 sps:$4 sm:$0xff]   ;;  %v4216_v15 = vld [vmem:[%s5778_s2 + $0x20] ss:$8 sps:$4 sm:$0xff]  }
  0x74   :  { %2667 = vmatpush1.bf16.msra.mxu0 %v4174_v39  ;;  %2442 = vmatprep.subr.bf16.mxu1 %v4179_v44  ;;  %v226_v35 = vrot.slane %v224_v30, 4  ;;  %v4206_v44 = vld [vmem:[%s5781_s6 + $0x4] ss:$8 sps:$4 sm:$0xff]  }
  0x75   :  { %2668 = vmatprep.subr.bf16.mxu0 %v4182_v48  ;;  %2622 = vmatmul.mubr.bf16.gmra.mrb[24].mxu0 %v4173_v42  ;;  %v216_v39 = vor.u32 %v215_v34, %v212_v33  ;;  %v4201_v42 = vld [vmem:[%s5776_s4 + $0x400] ss:$8 sps:$4 sm:$0xff]   ;;  %v4207_v48 = vld [vmem:[%s5778_s2 + $0x10] ss:$8 sps:$4 sm:$0xff]  }
  0x76   :  { %2631 = vmatprep.mubr.bf16.mxu0 %v3540_v20  ;;  %v184_v20 = vld [vmem:[%s5779_s0 + $0x28] sm:$0xf] }
  0x77   :  { %2443 = vmatpush1.bf16.msra.mxu1 %v4177_v43  ;;  %v230_v43 = vor.u32 %v229_v36, %v226_v35  ;;  %v217_v45 = vrot.slane %v216_v39, 4  ;;  %v280_v27 = vshrl.u32 %v184_v20, 16  ;;  %v283_v28 = vshll.u32 %v184_v20, 16  ;;  %v4218_v36 = vld [vmem:[%s5779_s0 + $0x28] ss:$8 sps:$4 sm:$0xff]  }
  0x78   :  { %2669 = vmatpush1.bf16.msra.mxu0 %v4180_v46  ;;  %2444 = vmatprep.subr.bf16.mxu1 %v4187_v5  ;;  %v4209_v5 = vld [vmem:[%s5779_s0 + $0x18] ss:$8 sps:$4 sm:$0xff]   ;;  %v4221_v39 = vld [vmem:[%s5776_s4 + $0x424] ss:$8 sps:$4 sm:$0xff]  }
  0x79   :  { %2670 = vmatprep.subr.bf16.mxu0 %v4191_v11  ;;  %v231_v46 = vrot.slane %v230_v43, 4  ;;  %v222_v50 = vsel %vm4631_vm2, %v217_v45, %v221_v40  ;;  %v258_v11 = vor.u32 %v257_v3, %v254_v2  ;;  %v282_v33 = vrot.slane %v280_v27, 4  ;;  %v4222_v40 = vld [vmem:[%s5781_s6 + $0x20] ss:$8 sps:$4 sm:$0xff]   ;;  %v4225_v45 = vld [vmem:[%s5778_s2 + $0x30] ss:$8 sps:$4 sm:$0xff]  }
  0x7a   :  { %2406 = vmatmul.mubr.bf16.gmra.mrb[28].mxu1 %v4184_v63  ;;  %v240_v63 = vrot.slane %v238_v56, 4  ;;  %v285_v34 = vrot.slane %v283_v28, 5  ;;  %v4227_v2 = vld [vmem:[%s5779_s0 + $0x38] ss:$8 sps:$4 sm:$0xff]  }
  0x7b   :  { %2445 = vmatpush1.bf16.msra.mxu1 %v4185_v4  ;;  %2448 = vmatprep.mubr.bf16.mxu1 %v4198_v21  ;;  %v236_v54 = vsel %vm4631_vm2, %v231_v46, %v235_v41  ;;  %v263_v4 = vrot.slane %v261_v62, 5  ;;  %v4226_v46 = vld [vmem:[%s5777_s1 + $0x38] ss:$8 sps:$4 sm:$0xff]  }
  0x7c   :  { %2671 = vmatpush1.bf16.msra.mxu0 %v4189_v10  ;;  %2446 = vmatprep.subr.bf16.mxu1 %v4194_v16  ;;  %v3509_v59 = vcombine.low %v222_v50, %v236_v54  ;;  %v244_v6 = vor.u32 %v243_v0, %v240_v63  ;;  %v4213_v10 = vld [vmem:[%s5781_s6 + $0x10] ss:$8 sps:$4 sm:$0xff]   ;;  %v286_v41 = vor.u32 %v285_v34, %v282_v33 }
  0x7d   :  { %2672 = vmatprep.subr.bf16.mxu0 %v4197_v19  ;;  %2632 = vmatmul.mubr.bf16.gmra.mrb[28].mxu0 %v4188_v13  ;;  %v4217_v16 = vld [vmem:[%s5777_s1 + $0x28] ss:$8 sps:$4 sm:$0xff]   ;;  %v183_v19 = vld [vmem:[%s5779_s0 + $0x24] sm:$0x1]  ;;  %v188_v50 = vld [vmem:[%s5779_s0 + $0x38] sm:$0xf] }
  0x7e   :  { %2674 = vmatprep.mubr.bf16.mxu0 %v4199_v22  ;;  %v245_v13 = vrot.slane %v244_v6, 4  ;;  %v185_v22 = vld [vmem:[%s5779_s0 + $0x2c] sm:$0x1]  ;;  %v275_v25 = vshll.u32 %v183_v19, 16  ;;  %v308_v57 = vshrl.u32 %v188_v50, 16  ;;  %v311_v58 = vshll.u32 %v188_v50, 16 }
  0x7f   :  { %2447 = vmatpush1.bf16.msra.mxu1 %v4192_v14  ;;  %v259_v14 = vrot.slane %v258_v11, 4  ;;  %v289_v29 = vshll.u32 %v185_v22, 16  ;;  %v4231_v6 = vld [vmem:[%s5781_s6 + $0x30] ss:$8 sps:$4 sm:$0xff]   ;;  %v193_v19 = vld [vmem:[%s5779_s0 + $0x54] sm:$0x1] }
  0x80   :  { %2673 = vmatpush1.bf16.msra.mxu0 %v4195_v18  ;;  %3040 = vmatprep.subr.bf16.mxu1 %v4206_v44  ;;  %v250_v17 = vsel %vm4631_vm2, %v245_v13, %v249_v1  ;;  %v182_v18 = vld [vmem:[%s5779_s0 + $0x20] sm:$0xf]  ;;  %v277_v32 = vrot.slane %v275_v25, 5  ;;  %v287_v44 = vrot.slane %v286_v41, 4  ;;  %v310_v63 = vrot.slane %v308_v57, 4 }
  0x81   :  { %2755 = vmatprep.subr.bf16.mxu0 %v4203_v38  ;;  %v264_v21 = vsel %vm4631_vm2, %v259_v14, %v263_v4  ;;  %v266_v23 = vshrl.u32 %v182_v18, 16  ;;  %v269_v24 = vshll.u32 %v182_v18, 16  ;;  %v291_v35 = vrot.slane %v289_v29, 5  ;;  %v4219_v38 = vld [vmem:[%s5776_s4 + $0x420] ss:$8 sps:$4 sm:$0xff]  }
  0x82   :  { %2449 = vmatmul.mubr.bf16.vlgmr.msra.gmra.mrb[0].mxu1 %v3509_v59  ;;  %v3510_v26 = vcombine.low %v250_v17, %v264_v21  ;;  %v317_v59 = vshll.u32 %v189_v52, 16  ;;  %v313_v0 = vrot.slane %v311_v58, 5  ;;  %v4228_v4 = vld [vmem:[%s5776_s4 + $0x430] ss:$8 sps:$4 sm:$0xff]  }
  0x83   :  { %3041 = vmatpush1.bf16.msra.mxu1 %v4204_v47  ;;  %2458 = vmatprep.mubr.bf16.mxu1 %v4207_v48  ;;  %v268_v30 = vrot.slane %v266_v23, 4  ;;  %v271_v31 = vrot.slane %v269_v24, 5  ;;  %v186_v48 = vld [vmem:[%s5779_s0 + $0x30] sm:$0xf]  ;;  %v292_v51 = vsel %vm4631_vm2, %v287_v44, %v291_v35  ;;  %v4237_v35 = vld [vmem:[%s5776_s4 + $0x440] ss:$8 sps:$4 sm:$0xff]  }
  0x84   :  { %3042 = vmatprep.subr.bf16.mxu1 %v4215_v12  ;;  %v294_v53 = vshrl.u32 %v186_v48, 16  ;;  %v297_v54 = vshll.u32 %v186_v48, 16  ;;  %v319_v1 = vrot.slane %v317_v59, 5  ;;  %v4234_v12 = vld [vmem:[%s5778_s2 + $0x48] ss:$8 sps:$4 sm:$0xff]  }
  0x85   :  { %2675 = vmatmul.mubr.bf16.vlgmr.msra.gmra.mrb[0].mxu0 %v4200_v37  ;;  %v272_v37 = vor.u32 %v271_v31, %v268_v30  ;;  %v4235_v13 = vld [vmem:[%s5777_s1 + $0x50] ss:$8 sps:$4 sm:$0xff]  }
  0x86   :  { %2756 = vmatpush1.bf16.msra.mxu0 %v4201_v42  ;;  %2684 = vmatprep.mubr.bf16.mxu0 %v4208_v49  ;;  %v4224_v42 = vld [vmem:[%s5781_s6 + $0x24] ss:$8 sps:$4 sm:$0xff]   ;;  %v187_v49 = vld [vmem:[%s5779_s0 + $0x34] sm:$0x1]  ;;  %v296_v60 = vrot.slane %v294_v53, 4  ;;  %v299_v61 = vrot.slane %v297_v54, 5 }
  0x87   :  { %2757 = vmatprep.subr.bf16.mxu0 %v4212_v9  ;;  %3043 = vmatpush1.bf16.msra.mxu1 %v4213_v10  ;;  %v273_v43 = vrot.slane %v272_v37, 4  ;;  %v303_v55 = vshll.u32 %v187_v49, 16  ;;  %v4233_v9 = vld [vmem:[%s5781_s6 + $0x34] ss:$8 sps:$4 sm:$0xff]   ;;  %v192_v17 = vld [vmem:[%s5779_s0 + $0x50] sm:$0xf] }
  0x88   :  { %3044 = vmatprep.subr.bf16.mxu1 %v4224_v42  ;;  %v300_v3 = vor.u32 %v299_v61, %v296_v60  ;;  %v336_v24 = vshrl.u32 %v192_v17, 16  ;;  %v339_v25 = vshll.u32 %v192_v17, 16  ;;  %v4236_v33 = vld [vmem:[%s5779_s0 + $0x50] ss:$8 sps:$4 sm:$0xff]   ;;  %v4240_v37 = vld [vmem:[%s5781_s6 + $0x40] ss:$8 sps:$4 sm:$0xff]  }
  0x89   :  { %v278_v47 = vsel %vm4631_vm2, %v273_v43, %v277_v32  ;;  %v305_v62 = vrot.slane %v303_v55, 5  ;;  %v4243_v42 = vld [vmem:[%s5778_s2 + $0x58] ss:$8 sps:$4 sm:$0xff]   ;;  %v197_v49 = vld [vmem:[%s5779_s0 + $0x64] sm:$0x1] }
  0x8a   :  { %2758 = vmatpush1.bf16.msra.mxu0 %v4210_v8  ;;  %2459 = vmatmul.mubr.bf16.gmra.mrb[4].mxu1 %v3510_v26  ;;  %v3511_v56 = vcombine.low %v278_v47, %v292_v51  ;;  %v314_v8 = vor.u32 %v313_v0, %v310_v63  ;;  %v301_v10 = vrot.slane %v300_v3, 4  ;;  %v345_v26 = vshll.u32 %v193_v19, 16  ;;  %v4244_v43 = vld [vmem:[%s5777_s1 + $0x60] ss:$8 sps:$4 sm:$0xff]   ;;  %v4249_v3 = vld [vmem:[%s5781_s6 + $0x50] ss:$8 sps:$4 sm:$0xff]  }
  0x8b   :  { %2468 = vmatprep.mubr.bf16.mxu1 %v4216_v15  ;;  %2759 = vmatprep.subr.bf16.mxu0 %v4221_v39  ;;  %v190_v15 = vld [vmem:[%s5779_s0 + $0x48] sm:$0xf]  ;;  %v338_v30 = vrot.slane %v336_v24, 4  ;;  %v341_v31 = vrot.slane %v339_v25, 5  ;;  %v4242_v39 = vld [vmem:[%s5781_s6 + $0x44] ss:$8 sps:$4 sm:$0xff]  }
  0x8c   :  { %3045 = vmatpush1.bf16.msra.mxu1 %v4222_v40  ;;  %v315_v11 = vrot.slane %v314_v8, 4  ;;  %v306_v14 = vsel %vm4631_vm2, %v301_v10, %v305_v62  ;;  %v322_v20 = vshrl.u32 %v190_v15, 16  ;;  %v325_v21 = vshll.u32 %v190_v15, 16  ;;  %v196_v47 = vld [vmem:[%s5779_s0 + $0x60] sm:$0xf] }
  0x8d   :  { %2685 = vmatmul.mubr.bf16.gmra.mrb[4].mxu0 %v4209_v5  ;;  %v4230_v5 = vld [vmem:[%s5776_s4 + $0x434] ss:$8 sps:$4 sm:$0xff]   ;;  %3046 = vmatprep.subr.bf16.mxu1 %v4233_v9  ;;  %v347_v32 = vrot.slane %v345_v26, 5  ;;  %v364_v54 = vshrl.u32 %v196_v47, 16  ;;  %v367_v55 = vshll.u32 %v196_v47, 16 }
  0x8e   :  { %2694 = vmatprep.mubr.bf16.mxu0 %v4217_v16  ;;  %2760 = vmatpush1.bf16.msra.mxu0 %v4219_v38  ;;  %v191_v16 = vld [vmem:[%s5779_s0 + $0x4c] sm:$0x1]  ;;  %v320_v18 = vsel %vm4631_vm2, %v315_v11, %v319_v1  ;;  %v324_v27 = vrot.slane %v322_v20, 4  ;;  %v327_v28 = vrot.slane %v325_v21, 5  ;;  %v342_v38 = vor.u32 %v341_v31, %v338_v30  ;;  %v4245_v63 = vld [vmem:[%s5779_s0 + $0x60] ss:$8 sps:$4 sm:$0xff]  }
  0x8f   :  { %2761 = vmatprep.subr.bf16.mxu0 %v4230_v5  ;;  %v331_v22 = vshll.u32 %v191_v16, 16  ;;  %v3512_v23 = vcombine.low %v306_v14, %v320_v18  ;;  %v366_v60 = vrot.slane %v364_v54, 4  ;;  %v369_v61 = vrot.slane %v367_v55, 5  ;;  %v4246_v1 = vld [vmem:[%s5776_s4 + $0x450] ss:$8 sps:$4 sm:$0xff]  }
  0x90   :  { %3047 = vmatpush1.bf16.msra.mxu1 %v4231_v6  ;;  %v328_v34 = vor.u32 %v327_v28, %v324_v27  ;;  %v343_v41 = vrot.slane %v342_v38, 4  ;;  %v4251_v5 = vld [vmem:[%s5781_s6 + $0x54] ss:$8 sps:$4 sm:$0xff]   ;;  %v4252_v9 = vld [vmem:[%s5778_s2 + $0x68] ss:$8 sps:$4 sm:$0xff]  }
  0x91   :  { %v333_v29 = vrot.slane %v331_v22, 5  ;;  %3048 = vmatprep.subr.bf16.mxu1 %v4242_v39  ;;  %v4253_v10 = vld [vmem:[%s5777_s1 + $0x70] ss:$8 sps:$4 sm:$0xff]   ;;  %v201_v16 = vld [vmem:[%s5779_s0 + $0x74] sm:$0x1] }
  0x92   :  { %2469 = vmatmul.mubr.bf16.gmra.mrb[8].mxu1 %v3511_v56  ;;  %2762 = vmatpush1.bf16.msra.mxu0 %v4228_v4  ;;  %v329_v40 = vrot.slane %v328_v34, 4  ;;  %v348_v48 = vsel %vm4631_vm2, %v343_v41, %v347_v32  ;;  %v373_v56 = vshll.u32 %v197_v49, 16  ;;  %v370_v4 = vor.u32 %v369_v61, %v366_v60  ;;  %v200_v14 = vld [vmem:[%s5779_s0 + $0x70] sm:$0xf]  ;;  %v4255_v32 = vld [vmem:[%s5776_s4 + $0x460] ss:$8 sps:$4 sm:$0xff]  }
  0x93   :  { %2478 = vmatprep.mubr.bf16.mxu1 %v4225_v45  ;;  %v194_v45 = vld [vmem:[%s5779_s0 + $0x58] sm:$0xf]  ;;  %v392_v21 = vshrl.u32 %v200_v14, 16  ;;  %v395_v22 = vshll.u32 %v200_v14, 16  ;;  %v4258_v34 = vld [vmem:[%s5781_s6 + $0x60] ss:$8 sps:$4 sm:$0xff]  }
  0x94   :  { %v334_v44 = vsel %vm4631_vm2, %v329_v40, %v333_v29  ;;  %3049 = vmatpush1.bf16.msra.mxu1 %v4240_v37  ;;  %v350_v50 = vshrl.u32 %v194_v45, 16  ;;  %v353_v51 = vshll.u32 %v194_v45, 16  ;;  %v375_v62 = vrot.slane %v373_v56, 5  ;;  %v4254_v30 = vld [vmem:[%s5779_s0 + $0x70] ss:$8 sps:$4 sm:$0xff]  }
  0x95   :  { %2695 = vmatmul.mubr.bf16.gmra.mrb[8].mxu0 %v4218_v36  ;;  %v4239_v36 = vld [vmem:[%s5776_s4 + $0x444] ss:$8 sps:$4 sm:$0xff]   ;;  %v3513_v53 = vcombine.low %v334_v44, %v348_v48  ;;  %v371_v8 = vrot.slane %v370_v4, 4  ;;  %3050 = vmatprep.subr.bf16.mxu1 %v4251_v5  ;;  %v394_v27 = vrot.slane %v392_v21, 4  ;;  %v397_v28 = vrot.slane %v395_v22, 5 }
  0x96   :  { %2704 = vmatprep.mubr.bf16.mxu0 %v4226_v46  ;;  %2763 = vmatprep.subr.bf16.mxu0 %v4239_v36  ;;  %v195_v46 = vld [vmem:[%s5779_s0 + $0x5c] sm:$0x1]  ;;  %v352_v57 = vrot.slane %v350_v50, 4  ;;  %v355_v58 = vrot.slane %v353_v51, 5  ;;  %v4260_v36 = vld [vmem:[%s5781_s6 + $0x64] ss:$8 sps:$4 sm:$0xff]  }
  0x97   :  { %2764 = vmatpush1.bf16.msra.mxu0 %v4237_v35  ;;  %v359_v52 = vshll.u32 %v195_v46, 16  ;;  %v376_v15 = vsel %vm4631_vm2, %v371_v8, %v375_v62  ;;  %v398_v35 = vor.u32 %v397_v28, %v394_v27  ;;  %v4261_v39 = vld [vmem:[%s5778_s2 + $0x78] ss:$8 sps:$4 sm:$0xff]   ;;  %v205_v46 = vld [vmem:[%s5779_s0 + $0x84] sm:$0x1] }
  0x98   :  { %v356_v0 = vor.u32 %v355_v58, %v352_v57  ;;  %3051 = vmatpush1.bf16.msra.mxu1 %v4249_v3  ;;  %v4262_v40 = vld [vmem:[%s5777_s1 + $0x80] ss:$8 sps:$4 sm:$0xff]   ;;  %v4264_v62 = vld [vmem:[%s5776_s4 + $0x470] ss:$8 sps:$4 sm:$0xff]   ;;  %v3590_v4 = vld [vmem:[%s5779_s0 + $0xc] sm:$0x1] }
  0x99   :  { %v361_v59 = vrot.slane %v359_v52, 5  ;;  %v399_v38 = vrot.slane %v398_v35, 4  ;;  %3052 = vmatprep.subr.bf16.mxu1 %v4260_v36  ;;  %v204_v44 = vld [vmem:[%s5779_s0 + $0x80] sm:$0xf]  ;;  %v3589_v3 = vld [vmem:[%s5779_s0 + $0x8] sm:$0xf] }
  0x9a   :  { %2479 = vmatmul.mubr.bf16.gmra.mrb[12].mxu1 %v3512_v23  ;;  %v357_v6 = vrot.slane %v356_v0, 4  ;;  %v401_v23 = vshll.u32 %v201_v16, 16  ;;  %v420_v51 = vshrl.u32 %v204_v44, 16  ;;  %v423_v52 = vshll.u32 %v204_v44, 16  ;;  %v4263_v60 = vld [vmem:[%s5779_s0 + $0x80] ss:$8 sps:$4 sm:$0xff]  }
  0x9b   :  { %2488 = vmatprep.mubr.bf16.mxu1 %v4234_v12  ;;  %v198_v12 = vld [vmem:[%s5779_s0 + $0x68] sm:$0xf]  ;;  %v4267_v0 = vld [vmem:[%s5781_s6 + $0x70] ss:$8 sps:$4 sm:$0xff]  }
  0x9c   :  { %v362_v11 = vsel %vm4631_vm2, %v357_v6, %v361_v59  ;;  %v378_v17 = vshrl.u32 %v198_v12, 16  ;;  %v381_v18 = vshll.u32 %v198_v12, 16  ;;  %v403_v29 = vrot.slane %v401_v23, 5  ;;  %3053 = vmatpush1.bf16.msra.mxu1 %v4258_v34  ;;  %v3591_v8 = vld [vmem:[%s5779_s0 + $0x10] sm:$0xf] }
  0x9d   :  { %2705 = vmatmul.mubr.bf16.gmra.mrb[12].mxu0 %v4227_v2  ;;  %v4248_v2 = vld [vmem:[%s5776_s4 + $0x454] ss:$8 sps:$4 sm:$0xff]   ;;  %v3514_v20 = vcombine.low %v362_v11, %v376_v15  ;;  %v422_v57 = vrot.slane %v420_v51, 4  ;;  %v425_v58 = vrot.slane %v423_v52, 5  ;;  %v4406_v6 = vmov 0  }
  0x9e   :  { %2714 = vmatprep.mubr.bf16.mxu0 %v4235_v13  ;;  %2765 = vmatprep.subr.bf16.mxu0 %v4248_v2  ;;  %v199_v13 = vld [vmem:[%s5779_s0 + $0x6c] sm:$0x1]  ;;  %v380_v24 = vrot.slane %v378_v17, 4  ;;  %v383_v25 = vrot.slane %v381_v18, 5  ;;  %v404_v45 = vsel %vm4631_vm2, %v399_v38, %v403_v29  ;;  %v4269_v2 = vld [vmem:[%s5781_s6 + $0x74] ss:$8 sps:$4 sm:$0xff]  }
  0x9f   :  { %2766 = vmatpush1.bf16.msra.mxu0 %v4246_v1  ;;  %v387_v19 = vshll.u32 %v199_v13, 16  ;;  %v426_v1 = vor.u32 %v425_v58, %v422_v57  ;;  %3054 = vmatprep.subr.bf16.mxu1 %v4269_v2  ;;  %v1095_v12 = vshll.u32 %v3589_v3, 16  ;;  %v1101_v13 = vshll.u32 %v3590_v4, 16  ;;  %v3593_v15 = vld [vmem:[%s5779_s0 + $0x18] sm:$0xf] }
  0xa0   :  { %v384_v31 = vor.u32 %v383_v25, %v380_v24  ;;  %v1106_v14 = vshrl.u32 %v3591_v8, 16  ;;  %3055 = vmatpush1.bf16.msra.mxu1 %v4267_v0  ;;  %v1109_v18 = vshll.u32 %v3591_v8, 16  ;;  %v3595_v25 = vld [vmem:[%s5779_s0 + $0x20] sm:$0xf]  ;;  %v3596_v29 = vld [vmem:[%s5779_s0 + $0x24] sm:$0x1] }
  0xa1   :  { %v389_v26 = vrot.slane %v387_v19, 5  ;;  %v427_v11 = vrot.slane %v426_v1, 4  ;;  %v1097_v22 = vrot.slane %v1095_v12, 5  ;;  %v1103_v23 = vrot.slane %v1101_v13, 5  ;;  %v3597_v35 = vld [vmem:[%s5779_s0 + $0x28] sm:$0xf] }
  0xa2   :  { %2489 = vmatmul.mubr.bf16.gmra.mrb[16].mxu1 %v3513_v53  ;;  %v385_v37 = vrot.slane %v384_v31, 4  ;;  %v429_v53 = vshll.u32 %v205_v46, 16  ;;  %v1108_v24 = vrot.slane %v1106_v14, 4  ;;  %v1111_v27 = vrot.slane %v1109_v18, 5  ;;  %v3601_v57 = vld [vmem:[%s5779_s0 + $0x38] sm:$0xf] }
  0xa3   :  { %2498 = vmatprep.mubr.bf16.mxu1 %v4243_v42  ;;  %v202_v42 = vld [vmem:[%s5779_s0 + $0x78] sm:$0xf]  ;;  %v1134_v34 = vshrl.u32 %v3595_v25, 16  ;;  %v1137_v38 = vshll.u32 %v3595_v25, 16  ;;  %v1151_v52 = vshll.u32 %v3597_v35, 16  ;;  %v1176_v4 = vshrl.u32 %v3601_v57, 16 }
  0xa4   :  { %v390_v41 = vsel %vm4631_vm2, %v385_v37, %v389_v26  ;;  %v406_v47 = vshrl.u32 %v202_v42, 16  ;;  %v409_v48 = vshll.u32 %v202_v42, 16  ;;  %v431_v59 = vrot.slane %v429_v53, 5  ;;  %v4398_v8 = vld [vmem:[%s5780_s3] ss:$8 sps:$4 sm:$0xff]  }
  0xa5   :  { %2715 = vmatmul.mubr.bf16.gmra.mrb[16].mxu0 %v4236_v33  ;;  %v4257_v33 = vld [vmem:[%s5776_s4 + $0x464] ss:$8 sps:$4 sm:$0xff]   ;;  %v3515_v50 = vcombine.low %v390_v41, %v404_v45  ;;  %v1112_v36 = vor.u32 %v1111_v27, %v1108_v24  ;;  %v1136_v42 = vrot.slane %v1134_v34, 4  ;;  %v1139_v46 = vrot.slane %v1137_v38, 5  ;;  %v3605_v27 = vld [vmem:[%s5779_s0 + $0x50] sm:$0xf] }
  0xa6   :  { %2724 = vmatprep.mubr.bf16.mxu0 %v4244_v43  ;;  %2767 = vmatprep.subr.bf16.mxu0 %v4257_v33  ;;  %v203_v43 = vld [vmem:[%s5779_s0 + $0x7c] sm:$0x1]  ;;  %v408_v54 = vrot.slane %v406_v47, 4  ;;  %v411_v55 = vrot.slane %v409_v48, 5  ;;  %v432_v21 = vsel %vm4631_vm2, %v427_v11, %v431_v59  ;;  %v3598_v47 = vld [vmem:[%s5779_s0 + $0x2c] sm:$0x1] }
  0xa7   :  { %2768 = vmatpush1.bf16.msra.mxu0 %v4255_v32  ;;  %v415_v49 = vshll.u32 %v203_v43, 16  ;;  %v1123_v32 = vshll.u32 %v3593_v15, 16  ;;  %v3599_v43 = vld [vmem:[%s5779_s0 + $0x30] sm:$0xf]  ;;  %v1113_v44 = vrot.slane %v1112_v36, 4  ;;  %v1148_v48 = vshrl.u32 %v3597_v35, 16 }
  0xa8   :  { %v412_v61 = vor.u32 %v411_v55, %v408_v54  ;;  %v1140_v54 = vor.u32 %v1139_v46, %v1136_v42  ;;  %v1165_v1 = vshll.u32 %v3599_v43, 16  ;;  %v1207_v34 = vshll.u32 %v3605_v27, 16  ;;  %v4399_v35 = vld [vmem:[%s5780_s3 + $0x10] ss:$8 sps:$4 sm:$0xff]   ;;  %v3609_v46 = vld [vmem:[%s5779_s0 + $0x60] sm:$0xf] }
  0xa9   :  { %v417_v56 = vrot.slane %v415_v49, 5  ;;  %v1125_v41 = vrot.slane %v1123_v32, 5  ;;  %v1150_v55 = vrot.slane %v1148_v48, 4 }
  0xaa   :  { %2499 = vmatmul.mubr.bf16.gmra.mrb[20].mxu1 %v3514_v20  ;;  %v413_v5 = vrot.slane %v412_v61, 4  ;;  %v3594_v20 = vld [vmem:[%s5779_s0 + $0x1c] sm:$0x1]  ;;  %v1153_v61 = vrot.slane %v1151_v52, 5  ;;  %v1167_v11 = vrot.slane %v1165_v1, 5 }
  0xab   :  { %2508 = vmatprep.mubr.bf16.mxu1 %v4252_v9  ;;  %v3592_v9 = vld [vmem:[%s5779_s0 + $0x14] sm:$0x1]  ;;  %v1129_v33 = vshll.u32 %v3594_v20, 16  ;;  %v3604_v20 = vld [vmem:[%s5779_s0 + $0x44] sm:$0x1] }
  0xac   :  { %v418_v16 = vsel %vm4631_vm2, %v413_v5, %v417_v56  ;;  %v1115_v19 = vshll.u32 %v3592_v9, 16  ;;  %v1162_v56 = vshrl.u32 %v3599_v43, 16  ;;  %v1154_v2 = vor.u32 %v1153_v61, %v1150_v55  ;;  %v3611_v52 = vld [vmem:[%s5779_s0 + $0x68] sm:$0xf] }
  0xad   :  { %2725 = vmatmul.mubr.bf16.gmra.mrb[20].mxu0 %v4245_v63  ;;  %v4266_v63 = vld [vmem:[%s5776_s4 + $0x474] ss:$8 sps:$4 sm:$0xff]   ;;  %v3516_v26 = vcombine.low %v418_v16, %v432_v21  ;;  %v1131_v45 = vrot.slane %v1129_v33, 5  ;;  %v1179_v5 = vshll.u32 %v3601_v57, 16  ;;  %v1178_v21 = vrot.slane %v1176_v4, 4 }
  0xae   :  { %2734 = vmatprep.mubr.bf16.mxu0 %v4253_v10  ;;  %2769 = vmatprep.subr.bf16.mxu0 %v4266_v63  ;;  %v1092_v10 = vshrl.u32 %v3589_v3, 16  ;;  %v1117_v28 = vrot.slane %v1115_v19, 5  ;;  %v1141_v63 = vrot.slane %v1140_v54, 4  ;;  %v1164_v0 = vrot.slane %v1162_v56, 4  ;;  %v3603_v3 = vld [vmem:[%s5779_s0 + $0x40] sm:$0xf] }
  0xaf   :  { %2770 = vmatpush1.bf16.msra.mxu0 %v4264_v62  ;;  %v1157_v62 = vshll.u32 %v3598_v47, 16  ;;  %v1155_v14 = vrot.slane %v1154_v2, 4  ;;  %v1190_v16 = vshrl.u32 %v3603_v3, 16  ;;  %v3602_v19 = vld [vmem:[%s5779_s0 + $0x3c] sm:$0x1]  ;;  %v1199_v32 = vshll.u32 %v3604_v20, 16 }
  0xb0   :  { %v1094_v17 = vrot.slane %v1092_v10, 4  ;;  %v1118_v53 = vsel %vm4631_vm2, %v1113_v44, %v1117_v28  ;;  %v3607_v28 = vld [vmem:[%s5779_s0 + $0x58] sm:$0xf]  ;;  %v1204_v33 = vshrl.u32 %v3605_v27, 16  ;;  %v1235_v54 = vshll.u32 %v3609_v46, 16 }
  0xb1   :  { %v1159_v13 = vrot.slane %v1157_v62, 5  ;;  %v1192_v25 = vrot.slane %v1190_v16, 4  ;;  %v1218_v38 = vshrl.u32 %v3607_v28, 16  ;;  %v1201_v48 = vrot.slane %v1199_v32, 5 }
  0xb2   :  { %2509 = vmatmul.mubr.bf16.gmra.mrb[24].mxu1 %v3515_v50  ;;  %v1098_v31 = vor.u32 %v1097_v22, %v1094_v17  ;;  %v1193_v17 = vshll.u32 %v3603_v3, 16  ;;  %v1181_v22 = vrot.slane %v1179_v5, 5  ;;  %v1206_v44 = vrot.slane %v1204_v33, 4  ;;  %v3610_v5 = vld [vmem:[%s5779_s0 + $0x64] sm:$0x1] }
  0xb3   :  { %2518 = vmatprep.mubr.bf16.mxu1 %v4261_v39  ;;  %v1143_v39 = vshll.u32 %v3596_v29, 16  ;;  %v1160_v29 = vsel %vm4631_vm2, %v1155_v14, %v1159_v13  ;;  %v1246_v62 = vshrl.u32 %v3611_v52, 16  ;;  %v1237_v1 = vrot.slane %v1235_v54, 5  ;;  %v3613_v13 = vld [vmem:[%s5779_s0 + $0x70] sm:$0xf] }
  0xb4   :  { %v3615_v14 = vld [vmem:[%s5779_s0 + $0x78] sm:$0xf]  ;;  %v1241_v16 = vshll.u32 %v3610_v5, 16  ;;  %v1263_v20 = vshll.u32 %v3613_v13, 16 }
  0xb5   :  { %2735 = vmatmul.mubr.bf16.gmra.mrb[24].mxu0 %v4254_v30  ;;  %v1120_v30 = vshrl.u32 %v3593_v15, 16  ;;  %v1145_v51 = vrot.slane %v1143_v39, 5  ;;  %v1168_v15 = vor.u32 %v1167_v11, %v1164_v0  ;;  %v1221_v39 = vshll.u32 %v3607_v28, 16 }
  0xb6   :  { %2744 = vmatprep.mubr.bf16.mxu0 %v4262_v40  ;;  %v1099_v40 = vrot.slane %v1098_v31, 4  ;;  %v1182_v31 = vor.u32 %v1181_v22, %v1178_v21  ;;  %v1248_v11 = vrot.slane %v1246_v62, 4  ;;  %v4401_v21 = vld [vmem:[%s5780_s3 + $0x30] ss:$8 sps:$4 sm:$0xff]   ;;  %v1243_v27 = vrot.slane %v1241_v16, 5 }
  0xb7   :  { %v1122_v37 = vrot.slane %v1120_v30, 4  ;;  %v1146_v10 = vsel %vm4631_vm2, %v1141_v63, %v1145_v51  ;;  %v1185_v30 = vshll.u32 %v3602_v19, 16  ;;  %v1223_v51 = vrot.slane %v1221_v39, 5 }
  0xb8   :  { %v1104_v49 = vsel %vm4631_vm2, %v1099_v40, %v1103_v23  ;;  %v1169_v23 = vrot.slane %v1168_v15, 4  ;;  %v1183_v43 = vrot.slane %v1182_v31, 4  ;;  %v1249_v63 = vshll.u32 %v3611_v52, 16 }
  0xb9   :  { %v1126_v50 = vor.u32 %v1125_v41, %v1122_v37  ;;  %v3621_v58 = vcombine.low %v1104_v49, %v1118_v53  ;;  %v1187_v40 = vrot.slane %v1185_v30, 5  ;;  %v3606_v41 = vld [vmem:[%s5779_s0 + $0x54] sm:$0x1]  ;;  %v3608_v49 = vld [vmem:[%s5779_s0 + $0x5c] sm:$0x1]  ;;  %v1232_v53 = vshrl.u32 %v3609_v46, 16 }
  0xba   :  { %2519 = vmatmul.mubr.bf16.gmra.mrb[28].mxu1 %v3516_v26  ;;  %v1195_v26 = vrot.slane %v1193_v17, 5  ;;  %v1213_v57 = vshll.u32 %v3606_v41, 16  ;;  %v1260_v19 = vshrl.u32 %v3613_v13, 16  ;;  %v3616_v30 = vld [vmem:[%s5779_s0 + $0x7c] sm:$0x1]  ;;  %v1265_v32 = vrot.slane %v1263_v20, 5 }
  0xbb   :  { %3072 = vmatprep.mubr.bf16.mxu1 %v4406_v6  ;;  %v1127_v59 = vrot.slane %v1126_v50, 4  ;;  %v1220_v50 = vrot.slane %v1218_v38, 4  ;;  %v1188_v55 = vsel %vm4631_vm2, %v1183_v43, %v1187_v40  ;;  %v1234_v0 = vrot.slane %v1232_v53, 4  ;;  %v3619_v38 = vld [vmem:[%s5779_s0 + $0x88] sm:$0xf] }
  0xbc   :  { %v1196_v37 = vor.u32 %v1195_v26, %v1192_v25  ;;  %v1215_v4 = vrot.slane %v1213_v57, 5  ;;  %v1277_v25 = vshll.u32 %v3615_v14, 16  ;;  %v1262_v31 = vrot.slane %v1260_v19, 4 }
  0xbd   :  { %2745 = vmatmul.mubr.bf16.gmra.mrb[28].mxu0 %v4263_v60  ;;  %v3600_v60 = vld [vmem:[%s5779_s0 + $0x34] sm:$0x1]  ;;  %v1132_v9 = vsel %vm4631_vm2, %v1127_v59, %v1131_v45  ;;  %v1209_v45 = vrot.slane %v1207_v34, 5  ;;  %v4400_v59 = vld [vmem:[%s5780_s3 + $0x20] ss:$8 sps:$4 sm:$0xff]   ;;  %v1224_v61 = vor.u32 %v1223_v51, %v1220_v50  ;;  %v1238_v15 = vor.u32 %v1237_v1, %v1234_v0 }
  0xbe   :  { %2787 = vmatprep.mubr.bf16.mxu0 %v4406_v6  ;;  %v1171_v12 = vshll.u32 %v3600_v60, 16  ;;  %v3622_v18 = vcombine.low %v1132_v9, %v1146_v10  ;;  %v1197_v47 = vrot.slane %v1196_v37, 4  ;;  %v3617_v37 = vld [vmem:[%s5779_s0 + $0x80] sm:$0xf]  ;;  %v1266_v41 = vor.u32 %v1265_v32, %v1262_v31 }
  0xbf   :  { %v1210_v56 = vor.u32 %v1209_v45, %v1206_v44  ;;  %v1225_v9 = vrot.slane %v1224_v61, 4  ;;  %v1239_v26 = vrot.slane %v1238_v15, 4  ;;  %v1288_v43 = vshrl.u32 %v3617_v37, 16  ;;  %v4402_v45 = vld [vmem:[%s5780_s3 + $0x48] ss:$8 sps:$4 sm:$0xff]  }
  0xc0   :  { %v1173_v24 = vrot.slane %v1171_v12, 5  ;;  %v1202_v60 = vsel %vm4631_vm2, %v1197_v47, %v1201_v48  ;;  %v1251_v12 = vrot.slane %v1249_v63, 5  ;;  %v1291_v44 = vshll.u32 %v3617_v37, 16  ;;  %v4403_v63 = vld [vmem:[%s5780_s3 + $0x58] ss:$8 sps:$4 sm:$0xff]  }
  0xc1   :  { %v3624_v2 = vcombine.low %v1188_v55, %v1202_v60  ;;  %v1211_v3 = vrot.slane %v1210_v56, 4  ;;  %v1244_v39 = vsel %vm4631_vm2, %v1239_v26, %v1243_v27  ;;  %v1302_v48 = vshrl.u32 %v3619_v38, 16  ;;  %v3618_v56 = vld [vmem:[%s5779_s0 + $0x84] sm:$0x1]  ;;  %v3620_v60 = vld [vmem:[%s5779_s0 + $0x8c] sm:$0x1] }
  0xc2   :  { %3073 = vmatmul.mubr.bf16.vlgmr.msra.gmra.mrb[32].mxu1 %v4398_v8  ;;  %v1174_v36 = vsel %vm4631_vm2, %v1169_v23, %v1173_v24  ;;  %v3612_v8 = vld [vmem:[%s5779_s0 + $0x6c] sm:$0x1]  ;;  %v1252_v23 = vor.u32 %v1251_v12, %v1248_v11  ;;  %v1274_v24 = vshrl.u32 %v3615_v14, 16  ;;  %v1267_v52 = vrot.slane %v1266_v41, 4  ;;  %v4404_v11 = vld [vmem:[%s5780_s3 + $0x68] ss:$8 sps:$4 sm:$0xff]  }
  0xc3   :  { %3082 = vmatprep.mubr.bf16.mxu1 %v4406_v6  ;;  %v3623_v42 = vcombine.low %v1160_v29, %v1174_v36  ;;  %v1216_v17 = vsel %vm4631_vm2, %v1211_v3, %v1215_v4  ;;  %v3614_v29 = vld [vmem:[%s5779_s0 + $0x74] sm:$0x1]  ;;  %v1279_v36 = vrot.slane %v1277_v25, 5  ;;  %v1290_v54 = vrot.slane %v1288_v43, 4  ;;  %v4405_v15 = vld [vmem:[%s5780_s3 + $0x78] ss:$8 sps:$4 sm:$0xff]  }
  0xc4   :  { %v1253_v33 = vrot.slane %v1252_v23, 4  ;;  %v1269_v40 = vshll.u32 %v3614_v29, 16  ;;  %v1293_v57 = vrot.slane %v1291_v44, 5  ;;  %v1297_v62 = vshll.u32 %v3618_v56, 16 }
  0xc5   :  { %2788 = vmatmul.mubr.bf16.vlgmr.msra.gmra.mrb[0].mxu0 %v3621_v58  ;;  %v1227_v58 = vshll.u32 %v3608_v49, 16  ;;  %v1305_v49 = vshll.u32 %v3619_v38, 16  ;;  %v1311_v3 = vshll.u32 %v3620_v60, 16  ;;  %v1573_v38 = vlaneseq }
  0xc6   :  { %2797 = vmatprep.mubr.bf16.mxu0 %v4406_v6  ;;  %v1271_v50 = vrot.slane %v1269_v40, 5  ;;  %v1294_v1 = vor.u32 %v1293_v57, %v1290_v54 }
  0xc7   :  { %v1229_v10 = vrot.slane %v1227_v58, 5  ;;  %v1304_v58 = vrot.slane %v1302_v48, 4  ;;  %v1574_v40 = vshrl.u32 %v1573_v38, 7 }
  0xc8   :  { %v1272_v61 = vsel %vm4631_vm2, %v1267_v52, %v1271_v50  ;;  %v1295_v5 = vrot.slane %v1294_v1, 4  ;;  %v2948_v50 = vld [vmem:[%s5783_s7] sm:$0x3] }
  0xc9   :  { %v1230_v22 = vsel %vm4631_vm2, %v1225_v9, %v1229_v10  ;;  %v1313_v10 = vrot.slane %v1311_v3, 5  ;;  %v1575_v44 = vsub.s32 0, %v1574_v40 }
  0xca   :  { %3083 = vmatmul.mubr.bf16.gmra.mrb[36].mxu1 %v4399_v35  ;;  %v3625_v28 = vcombine.low %v1216_v17, %v1230_v22  ;;  %v1276_v35 = vrot.slane %v1274_v24, 4 }
  0xcb   :  { %3092 = vmatprep.mubr.bf16.mxu1 %v4406_v6  ;;  %v5518_v54 = vrot.slane %v2948_v50, %v1575_v44 }
  0xcc   :  { %v1280_v47 = vor.u32 %v1279_v36, %v1276_v35 }
  0xcd   :  { %2798 = vmatmul.mubr.bf16.gmra.mrb[4].mxu0 %v3622_v18  ;;  %v1255_v18 = vshll.u32 %v3612_v8, 16  ;;  %v1299_v8 = vrot.slane %v1297_v62, 5 }
  0xce   :  { %2807 = vmatprep.mubr.bf16.mxu0 %v4406_v6  ;;  %v1281_v55 = vrot.slane %v1280_v47, 4 }
  0xcf   :  { %v1257_v34 = vrot.slane %v1255_v18, 5  ;;  %v1300_v12 = vsel %vm4631_vm2, %v1295_v5, %v1299_v8 }
  0xd1   :  { %v1258_v46 = vsel %vm4631_vm2, %v1253_v33, %v1257_v34 }
  0xd2   :  { %3093 = vmatmul.mubr.bf16.gmra.mrb[40].mxu1 %v4400_v59  ;;  %v3626_v51 = vcombine.low %v1244_v39, %v1258_v46  ;;  %v1307_v59 = vrot.slane %v1305_v49, 5  ;;  %v1571_v46 = vld [vmem:[%s5782_s5] sm:$0x3] }
  0xd3   :  { %3102 = vmatprep.mubr.bf16.mxu1 %v4406_v6  ;;  %v5509_v47 = vrot.slane %v1571_v46, %v1575_v44 }
  0xd5   :  { %2808 = vmatmul.mubr.bf16.gmra.mrb[8].mxu0 %v3623_v42  ;;  %v1283_v42 = vshll.u32 %v3616_v30, 16 }
  0xd6   :  { %2817 = vmatprep.mubr.bf16.mxu0 %v4406_v6 }
  0xd7   :  { %v1285_v53 = vrot.slane %v1283_v42, 5 }
  0xd9   :  { %v1286_v0 = vsel %vm4631_vm2, %v1281_v55, %v1285_v53 }
  0xda   :  { %3103 = vmatmul.mubr.bf16.gmra.mrb[44].mxu1 %v4401_v21  ;;  %v3627_v4 = vcombine.low %v1272_v61, %v1286_v0 }
  0xdb   :  { %3112 = vmatprep.mubr.bf16.mxu1 %v4406_v6 }
  0xdd   :  { %2818 = vmatmul.mubr.bf16.gmra.mrb[12].mxu0 %v3624_v2  ;;  %v1308_v2 = vor.u32 %v1307_v59, %v1304_v58 }
  0xde   :  { %2827 = vmatprep.mubr.bf16.mxu0 %v4406_v6 }
  0xdf   :  { %v1309_v9 = vrot.slane %v1308_v2, 4 }
  0xe1   :  { %v1314_v13 = vsel %vm4631_vm2, %v1309_v9, %v1313_v10 }
  0xe2   :  { %3113 = vmatmul.mubr.bf16.gmra.mrb[48].mxu1 %v4402_v45  ;;  %v3628_v14 = vcombine.low %v1300_v12, %v1314_v13  ;;  %v1579_v45 = vsub.s32 1, %v1574_v40 }
  0xe3   :  { %3122 = vmatprep.mubr.bf16.mxu1 %v4406_v6 }
  0xe4   :  { %v5511_v48 = vrot.slane %v1571_v46, %v1579_v45  ;;  %v5520_v55 = vrot.slane %v2948_v50, %v1579_v45 }
  0xe5   :  { %2828 = vmatmul.mubr.bf16.gmra.mrb[16].mxu0 %v3625_v28 }
  0xe6   :  { %2837 = vmatprep.mubr.bf16.mxu0 %v4406_v6 }
  0xea   :  { %3123 = vmatmul.mubr.bf16.gmra.mrb[52].mxu1 %v4403_v63 }
  0xeb   :  { %3132 = vmatprep.mubr.bf16.mxu1 %v4406_v6 }
  0xed   :  { %2838 = vmatmul.mubr.bf16.gmra.mrb[20].mxu0 %v3626_v51 }
  0xee   :  { %2847 = vmatprep.mubr.bf16.mxu0 %v4406_v6 }
  0xf2   :  { %3133 = vmatmul.mubr.bf16.gmra.mrb[56].mxu1 %v4404_v11 }
  0xf3   :  { %3142 = vmatprep.mubr.bf16.mxu1 %v4406_v6 }
  0xf5   :  { %2848 = vmatmul.mubr.bf16.gmra.mrb[24].mxu0 %v3627_v4 }
  0xf6   :  { %2857 = vmatprep.mubr.bf16.mxu0 %v4406_v6 }
  0xfa   :  { %3143 = vmatmul.mubr.bf16.gmra.mrb[60].mxu1 %v4405_v15 }
  0xfd   :  { %2858 = vmatmul.mubr.bf16.gmra.mrb[28].mxu0 %v3628_v14 }
 0x155   :  { %v2450_v16 = vpop.f32.mrb[0].mxu1 }
 0x156   :  { %v2452_v17 = vpop.f32.mrb[1].mxu1  ;;  %v3821_v56 = vadd.f32 %v2450_v16, %v5509_v47 }
 0x157   :  { %v2454_v18 = vpop.f32.mrb[2].mxu1  ;;  %v3823_v57 = vadd.f32 %v2452_v17, %v5511_v48 }
 0x158   :  { %v2456_v19 = vpop.f32.mrb[3].mxu1  ;;  %v3825_v58 = vadd.f32 %v2454_v18, %v5509_v47 }
 0x159   :  { %v3827_v59 = vadd.f32 %v2456_v19, %v5511_v48 }
 0x15d   :  { %v2460_v20 = vpop.f32.mrb[4].mxu1 }
 0x15e   :  { %v2462_v21 = vpop.f32.mrb[5].mxu1  ;;  %v3829_v60 = vadd.f32 %v2460_v20, %v5509_v47 }
 0x15f   :  { %v2464_v22 = vpop.f32.mrb[6].mxu1  ;;  %v3831_v61 = vadd.f32 %v2462_v21, %v5511_v48 }
 0x160   :  { %v2466_v23 = vpop.f32.mrb[7].mxu1  ;;  %v5529_v62 = vadd.f32 %v2464_v22, %v5509_v47 }
 0x161   :  { %v5532_v63 = vadd.f32 %v2466_v23, %v5511_v48 }
 0x165   :  { %v2470_v24 = vpop.f32.mrb[8].mxu1 }
 0x166   :  { %v2472_v7 = vpop.f32.mrb[9].mxu1  ;;  %v5535_v0 = vadd.f32 %v2470_v24, %v5509_v47 }
 0x167   :  { %v2474_v25 = vpop.f32.mrb[10].mxu1  ;;  %v5538_v1 = vadd.f32 %v2472_v7, %v5511_v48 }
 0x168   :  { %v2476_v26 = vpop.f32.mrb[11].mxu1  ;;  %v5541_v2 = vadd.f32 %v2474_v25, %v5509_v47 }
 0x169   :  { %v5544_v3 = vadd.f32 %v2476_v26, %v5511_v48 }
 0x16d   :  { %v2480_v6 = vpop.f32.mrb[12].mxu1 }
 0x16e   :  { %v2482_v27 = vpop.f32.mrb[13].mxu1  ;;  %v5547_v4 = vadd.f32 %v2480_v6, %v5509_v47 }
 0x16f   :  { %v2484_v28 = vpop.f32.mrb[14].mxu1  ;;  %v5550_v5 = vadd.f32 %v2482_v27, %v5511_v48 }
 0x170   :  { %v2486_v29 = vpop.f32.mrb[15].mxu1  ;;  %v5553_v8 = vadd.f32 %v2484_v28, %v5509_v47 }
 0x171   :  { %v5556_v9 = vadd.f32 %v2486_v29, %v5511_v48 }
 0x175   :  { %v2490_v30 = vpop.f32.mrb[16].mxu1 }
 0x176   :  { %v2492_v31 = vpop.f32.mrb[17].mxu1  ;;  %v5559_v11 = vadd.f32 %v2490_v30, %v5509_v47 }
 0x177   :  { %v2494_v32 = vpop.f32.mrb[18].mxu1  ;;  %v5562_v12 = vadd.f32 %v2492_v31, %v5511_v48 }
 0x178   :  { %v2496_v33 = vpop.f32.mrb[19].mxu1  ;;  %v5565_v13 = vadd.f32 %v2494_v32, %v5509_v47 }
 0x179   :  { %v5568_v17 = vadd.f32 %v2496_v33, %v5511_v48 }
 0x17d   :  { %v2500_v34 = vpop.f32.mrb[20].mxu1 }
 0x17e   :  { %v2502_v35 = vpop.f32.mrb[21].mxu1  ;;  %v5571_v18 = vadd.f32 %v2500_v34, %v5509_v47 }
 0x17f   :  { %v2504_v36 = vpop.f32.mrb[22].mxu1  ;;  %v5574_v19 = vadd.f32 %v2502_v35, %v5511_v48 }
 0x180   :  { %v2506_v37 = vpop.f32.mrb[23].mxu1  ;;  %v5577_v23 = vadd.f32 %v2504_v36, %v5509_v47 }
 0x181   :  { %v5581_v27 = vadd.f32 %v2506_v37, %v5511_v48 }
 0x185   :  { %v2510_v39 = vpop.f32.mrb[24].mxu1 }
 0x186   :  { %v2512_v41 = vpop.f32.mrb[25].mxu1  ;;  %v5585_v32 = vadd.f32 %v2510_v39, %v5509_v47 }
 0x187   :  { %v2514_v42 = vpop.f32.mrb[26].mxu1  ;;  %v5588_v33 = vadd.f32 %v2512_v41, %v5511_v48 }
 0x188   :  { %v2516_v43 = vpop.f32.mrb[27].mxu1  ;;  %v5591_v36 = vadd.f32 %v2514_v42, %v5509_v47 }
 0x189   :  { %v5594_v38 = vadd.f32 %v2516_v43, %v5511_v48 }
 0x18d   :  { %v2520_v49 = vpop.f32.mrb[28].mxu1 }
 0x18e   :  { %v2522_v51 = vpop.f32.mrb[29].mxu1  ;;  %v5597_v44 = vadd.f32 %v2520_v49, %v5509_v47 }
 0x18f   :  { %v2524_v52 = vpop.f32.mrb[30].mxu1  ;;  %v5601_v41 = vadd.f32 %v2522_v51, %v5511_v48 }
 0x190   :  { %v5516_v53 = vpop.f32.mrb[31].mxu1  ;;  %v5605_v43 = vadd.f32 %v2524_v52, %v5509_v47 }
 0x195   :  { %v3074_v16 = vpop.f32.mrb[32].mxu1 }
 0x196   :  { %v3076_v22 = vpop.f32.mrb[33].mxu1  ;;  %v3075_v25 = vadd.f32 %v3074_v16, %v5518_v54 }
 0x197   :  { %v3078_v6 = vpop.f32.mrb[34].mxu1  ;;  %v3077_v30 = vadd.f32 %v3076_v22, %v5520_v55 }
 0x198   :  { %v2789_v10 = vpop.f32.mrb[0].mxu0  ;;  %v3080_v31 = vpop.f32.mrb[35].mxu1  ;;  %v3079_v39 = vadd.f32 %v3078_v6, %v5518_v54 }
 0x199   :  { %v3822_v14 = vadd.f32 %v3821_v56, %v2789_v10  ;;  %v2791_v15 = vpop.f32.mrb[1].mxu0  ;;  %v3081_v42 = vadd.f32 %v3080_v31, %v5520_v55 }
 0x19a   :  { %v3824_v20 = vadd.f32 %v3823_v57, %v2791_v15  ;;  %v2793_v21 = vpop.f32.mrb[2].mxu0 }
 0x19b   :  { %v2868_v24 = vmul.f32 0.2, %v3822_v14  ;;  %v3826_v7 = vadd.f32 %v3825_v58, %v2793_v21  ;;  %v2795_v26 = vpop.f32.mrb[3].mxu0 }
 0x19c   :  { %v2869_v28 = vmul.f32 0.2, %v3824_v20  ;;  %v3828_v29 = vadd.f32 %v3827_v59, %v2795_v26 }
 0x19d   :  { %v2900_v34 = vmax.f32 %v3822_v14, %v2868_v24  ;;  %v2870_v35 = vmul.f32 0.2, %v3826_v7  ;;  %v3084_v14 = vpop.f32.mrb[36].mxu1 }
 0x19e   :  { %v2901_v37 = vmax.f32 %v3824_v20, %v2869_v28  ;;  %v2871_v40 = vmul.f32 0.2, %v3828_v29  ;;  %v3085_v51 = vadd.f32 %v3084_v14, %v5518_v54  ;;  %v3086_v22 = vpop.f32.mrb[37].mxu1 }
 0x19f   :  { %v2902_v45 = vmax.f32 %v3826_v7, %v2870_v35  ;;  %v3153_v46 = vadd.f32 %v3075_v25, %v2900_v34 }
 0x1a0   :  { %v2903_v50 = vmax.f32 %v3828_v29, %v2871_v40  ;;  %v3154_v56 = vadd.f32 %v3077_v30, %v2901_v37  ;;  %v2799_v57 = vpop.f32.mrb[4].mxu0  ;;  %v3088_v29 = vpop.f32.mrb[38].mxu1 }
 0x1a1   :  { %v3185_v58 = vsub.f32 0.0, %v3153_v46  ;;  %v3155_v59 = vadd.f32 %v3079_v39, %v2902_v45  ;;  %v3830_v10 = vadd.f32 %v3829_v60, %v2799_v57  ;;  %v2801_v49 = vpop.f32.mrb[5].mxu0  ;;  %v3090_v34 = vpop.f32.mrb[39].mxu1 }
 0x1a2   :  { %v3186_v15 = vsub.f32 0.0, %v3154_v56  ;;  %v3156_v16 = vadd.f32 %v3081_v42, %v2903_v50  ;;  %v3832_v20 = vadd.f32 %v3831_v61, %v2801_v49  ;;  %v2803_v21 = vpop.f32.mrb[6].mxu0  ;;  %v3089_v50 = vadd.f32 %v3088_v29, %v5518_v54 }
 0x1a3   :  { %v3217_v24 = vmul.f32 1.442695, %v3185_v58  ;;  %v3187_v7 = vsub.f32 0.0, %v3155_v59  ;;  %v2872_v25 = vmul.f32 0.2, %v3830_v10  ;;  %v3834_v26 = vadd.f32 %v5529_v62, %v2803_v21  ;;  %v2805_v6 = vpop.f32.mrb[7].mxu0 }
 0x1a4   :  { %v3219_v47 = vmul.f32 1.442695, %v3186_v15  ;;  %v3188_v52 = vsub.f32 0.0, %v3156_v16  ;;  %v2873_v28 = vmul.f32 0.2, %v3832_v20  ;;  %v3836_v60 = vadd.f32 %v5532_v63, %v2805_v6 }
 0x1a5   :  { %4270 = vpow2.f32 %v3217_v24  ;;  %v3221_v30 = vmul.f32 1.442695, %v3187_v7  ;;  %v2904_v31 = vmax.f32 %v3830_v10, %v2872_v25  ;;  %v2874_v61 = vmul.f32 0.2, %v3834_v26  ;;  %v3094_v49 = vpop.f32.mrb[40].mxu1 }
 0x1a6   :  { %4272 = vpow2.f32 %v3219_v47  ;;  %v3223_v35 = vmul.f32 1.442695, %v3188_v52  ;;  %v2905_v37 = vmax.f32 %v3832_v20, %v2873_v28  ;;  %v2875_v40 = vmul.f32 0.2, %v3836_v60 }
 0x1a7   :  { %4274 = vpow2.f32 %v3221_v30  ;;  %v2906_v45 = vmax.f32 %v3834_v26, %v2874_v61  ;;  %v3157_v46 = vadd.f32 %v3085_v51, %v2904_v31  ;;  %v3087_v62 = vadd.f32 %v3086_v22, %v5520_v55  ;;  %v3096_v51 = vpop.f32.mrb[41].mxu1 }
 0x1a8   :  { %4276 = vpow2.f32 %v3223_v35  ;;  %v2907_v39 = vmax.f32 %v3836_v60, %v2875_v40  ;;  %v3091_v63 = vadd.f32 %v3090_v34, %v5520_v55  ;;  %v2809_v56 = vpop.f32.mrb[8].mxu0  ;;  %v5615_v42 = vadd.f32 %v5516_v53, %v5511_v48  ;;  %v3098_v47 = vpop.f32.mrb[42].mxu1 }
 0x1a9   :  { %v3189_v57 = vsub.f32 0.0, %v3157_v46  ;;  %v3158_v58 = vadd.f32 %v3087_v62, %v2905_v37  ;;  %v3838_v59 = vadd.f32 %v5535_v0, %v2809_v56  ;;  %v2811_v10 = vpop.f32.mrb[9].mxu0  ;;  %v3159_v14 = vadd.f32 %v3089_v50, %v2906_v45  ;;  %v3100_v60 = vpop.f32.mrb[43].mxu1 }
 0x1aa   :  { %v3160_v15 = vadd.f32 %v3091_v63, %v2907_v39  ;;  %v3840_v16 = vadd.f32 %v5538_v1, %v2811_v10  ;;  %v2813_v20 = vpop.f32.mrb[10].mxu0  ;;  %v3095_v21 = vadd.f32 %v3094_v49, %v5518_v54  ;;  %v3097_v37 = vadd.f32 %v3096_v51, %v5520_v55 }
 0x1ab   :  { %v3225_v22 = vmul.f32 1.442695, %v3189_v57  ;;  %v3190_v24 = vsub.f32 0.0, %v3158_v58  ;;  %v2876_v7 = vmul.f32 0.2, %v3838_v59  ;;  %v3842_v48 = vadd.f32 %v5541_v2, %v2813_v20  ;;  %v2815_v53 = vpop.f32.mrb[11].mxu0 }
 0x1ac   :  { %v3191_v25 = vsub.f32 0.0, %v3159_v14  ;;  %v3192_v26 = vsub.f32 0.0, %v3160_v15  ;;  %v2877_v6 = vmul.f32 0.2, %v3840_v16  ;;  %v3844_v0 = vadd.f32 %v5544_v3, %v2815_v53 }
 0x1ad   :  { %4278 = vpow2.f32 %v3225_v22  ;;  %v3227_v52 = vmul.f32 1.442695, %v3190_v24  ;;  %v2908_v28 = vmax.f32 %v3838_v59, %v2876_v7  ;;  %v2878_v1 = vmul.f32 0.2, %v3842_v48  ;;  %v3104_v58 = vpop.f32.mrb[44].mxu1 }
 0x1ae   :  { %v3229_v29 = vmul.f32 1.442695, %v3191_v25  ;;  %v3231_v30 = vmul.f32 1.442695, %v3192_v26  ;;  %v2909_v31 = vmax.f32 %v3840_v16, %v2877_v6  ;;  %v2879_v61 = vmul.f32 0.2, %v3844_v0 }
 0x1af   :  { %v4271_v34 = vpop.eup %4270  ;;  %4280 = vpow2.f32 %v3227_v52  ;;  %v2910_v35 = vmax.f32 %v3842_v48, %v2878_v1  ;;  %v3161_v2 = vadd.f32 %v3095_v21, %v2908_v28  ;;  %v3099_v46 = vadd.f32 %v3098_v47, %v5518_v54  ;;  %v3106_v16 = vpop.f32.mrb[45].mxu1 }
 0x1b0   :  { %v4273_v40 = vpop.eup %4272  ;;  %v3281_v45 = vadd.f32 1.0, %v4271_v34  ;;  %4282 = vpow2.f32 %v3229_v29  ;;  %v2911_v3 = vmax.f32 %v3844_v0, %v2879_v61  ;;  %v2819_v62 = vpop.f32.mrb[12].mxu0  ;;  %v3162_v56 = vadd.f32 %v3097_v37, %v2909_v31 }
 0x1b1   :  { %v4275_v39 = vpop.eup %4274  ;;  %v3282_v50 = vadd.f32 1.0, %v4273_v40  ;;  %4284 = vpow2.f32 %v3231_v30  ;;  %v3193_v63 = vsub.f32 0.0, %v3161_v2  ;;  %v2821_v57 = vpop.f32.mrb[13].mxu0  ;;  %v3163_v49 = vadd.f32 %v3099_v46, %v2910_v35 }
 0x1b2   :  { %v4277_v59 = vpop.eup %4276  ;;  %4286 = vrcp.f32 %v3281_v45  ;;  %v3283_v10 = vadd.f32 1.0, %v4275_v39  ;;  %v3101_v14 = vadd.f32 %v3100_v60, %v5520_v55  ;;  %v2823_v15 = vpop.f32.mrb[14].mxu0  ;;  %v3194_v51 = vsub.f32 0.0, %v3162_v56 }
 0x1b3   :  { %4288 = vrcp.f32 %v3282_v50  ;;  %v3284_v20 = vadd.f32 1.0, %v4277_v59  ;;  %v3233_v21 = vmul.f32 1.442695, %v3193_v63  ;;  %v2825_v22 = vpop.f32.mrb[15].mxu0  ;;  %v3108_v24 = vpop.f32.mrb[46].mxu1  ;;  %v3195_v7 = vsub.f32 0.0, %v3163_v49 }
 0x1b4   :  { %4290 = vrcp.f32 %v3283_v10  ;;  %v3164_v48 = vadd.f32 %v3101_v14, %v2911_v3  ;;  %v3846_v53 = vadd.f32 %v5547_v4, %v2819_v62  ;;  %v3110_v25 = vpop.f32.mrb[47].mxu1  ;;  %v3235_v26 = vmul.f32 1.442695, %v3194_v51 }
 0x1b5   :  { %4292 = vrcp.f32 %v3284_v20  ;;  %v3848_v6 = vadd.f32 %v5550_v5, %v2821_v57  ;;  %v3850_v0 = vadd.f32 %v5553_v8, %v2823_v15  ;;  %v3237_v47 = vmul.f32 1.442695, %v3195_v7  ;;  %v5631_v45 = vpop.f32.mrb[48].mxu1 }
 0x1b6   :  { %4294 = vpow2.f32 %v3233_v21  ;;  %v3196_v52 = vsub.f32 0.0, %v3164_v48  ;;  %v2880_v28 = vmul.f32 0.2, %v3846_v53  ;;  %v3105_v30 = vadd.f32 %v3104_v58, %v5518_v54  ;;  %v5634_v63 = vpop.f32.mrb[49].mxu1 }
 0x1b7   :  { %v4279_v1 = vpop.eup %4278  ;;  %4296 = vpow2.f32 %v3235_v26  ;;  %v2881_v60 = vmul.f32 0.2, %v3848_v6  ;;  %v2882_v29 = vmul.f32 0.2, %v3850_v0  ;;  %v3852_v8 = vadd.f32 %v5556_v9, %v2825_v22  ;;  %v3118_v10 = vpop.f32.mrb[50].mxu1 }
 0x1b8   :  { %v3285_v31 = vadd.f32 1.0, %v4279_v1  ;;  %4298 = vpow2.f32 %v3237_v47  ;;  %v3239_v4 = vmul.f32 1.442695, %v3196_v52  ;;  %v2912_v61 = vmax.f32 %v3846_v53, %v2880_v28  ;;  %v2829_v34 = vpop.f32.mrb[16].mxu0  ;;  %v3120_v20 = vpop.f32.mrb[51].mxu1 }
 0x1b9   :  { %v4281_v35 = vpop.eup %4280  ;;  %v2913_v2 = vmax.f32 %v3848_v6, %v2881_v60  ;;  %v2914_v5 = vmax.f32 %v3850_v0, %v2882_v29  ;;  %v3107_v37 = vadd.f32 %v3106_v16, %v5520_v55  ;;  %v2831_v40 = vpop.f32.mrb[17].mxu0  ;;  %v3109_v39 = vadd.f32 %v3108_v24, %v5518_v54 }
 0x1ba   :  { %v4283_v3 = vpop.eup %4282  ;;  %4300 = vrcp.f32 %v3285_v31  ;;  %v3286_v46 = vadd.f32 1.0, %v4281_v35  ;;  %v3165_v62 = vadd.f32 %v3105_v30, %v2912_v61  ;;  %v2833_v50 = vpop.f32.mrb[18].mxu0  ;;  %v2883_v58 = vmul.f32 0.2, %v3852_v8 }
 0x1bb   :  { %v4285_v56 = vpop.eup %4284  ;;  %v3287_v57 = vadd.f32 1.0, %v4283_v3  ;;  %4302 = vpow2.f32 %v3239_v4  ;;  %v3166_v59 = vadd.f32 %v3107_v37, %v2913_v2  ;;  %v2835_v9 = vpop.f32.mrb[19].mxu0  ;;  %v3167_v16 = vadd.f32 %v3109_v39, %v2914_v5 }
 0x1bc   :  { %v4287_v49 = vpop.eup %4286  ;;  %4304 = vrcp.f32 %v3286_v46  ;;  %v3288_v14 = vadd.f32 1.0, %v4285_v56  ;;  %v3197_v15 = vsub.f32 0.0, %v3165_v62  ;;  %v2915_v51 = vmax.f32 %v3852_v8, %v2883_v58 }
 0x1bd   :  { %v4289_v21 = vpop.eup %4288  ;;  %4306 = vrcp.f32 %v3287_v57  ;;  %v3198_v22 = vsub.f32 0.0, %v3166_v59  ;;  %v3111_v24 = vadd.f32 %v3110_v25, %v5520_v55  ;;  %v3199_v26 = vsub.f32 0.0, %v3167_v16 }
 0x1be   :  { %v4291_v7 = vpop.eup %4290  ;;  %v3805_v48 = vpack.c.bf16 %v4289_v21, %v4287_v49  ;;  %4308 = vrcp.f32 %v3288_v14  ;;  %v3241_v53 = vmul.f32 1.442695, %v3197_v15  ;;  %v3854_v52 = vadd.f32 %v5559_v11, %v2829_v34  ;;  %v5643_v11 = vpop.f32.mrb[52].mxu1 }
 0x1bf   :  { %v4293_v6 = vpop.eup %4292  ;;  %v3243_v0 = vmul.f32 1.442695, %v3198_v22  ;;  %v3168_v47 = vadd.f32 %v3111_v24, %v2915_v51  ;;  %v3856_v28 = vadd.f32 %v5562_v12, %v2831_v40  ;;  %v3245_v25 = vmul.f32 1.442695, %v3199_v26  ;;  %v5650_v62 = vpop.f32.mrb[53].mxu1 }
 0x1c0   :  { %v4295_v1 = vpop.eup %4294  ;;  %3473 = vst [vmem:[%s5784_s8] sm:$0xff] %v3805_v48  ;;  %v3806_v60 = vpack.c.bf16 %v4293_v6, %v4291_v7  ;;  %4310 = vpow2.f32 %v3241_v53  ;;  %v3858_v29 = vadd.f32 %v5565_v13, %v2833_v50  ;;  %v2839_v30 = vpop.f32.mrb[20].mxu0  ;;  %v2884_v35 = vmul.f32 0.2, %v3854_v52 }
 0x1c1   :  { %v4297_v31 = vpop.eup %4296  ;;  %v3289_v4 = vadd.f32 1.0, %v4295_v1  ;;  %4312 = vpow2.f32 %v3243_v0  ;;  %v3200_v61 = vsub.f32 0.0, %v3168_v47  ;;  %v2841_v2 = vpop.f32.mrb[21].mxu0  ;;  %v2885_v5 = vmul.f32 0.2, %v3856_v28 }
 0x1c2   :  { %v4299_v12 = vpop.eup %4298  ;;  %3474 = vst [vmem:[%s5784_s8 + $0x8] sm:$0xff] %v3806_v60  ;;  %v3290_v34 = vadd.f32 1.0, %v4297_v31  ;;  %4314 = vpow2.f32 %v3245_v25  ;;  %v2886_v8 = vmul.f32 0.2, %v3858_v29  ;;  %v2843_v37 = vpop.f32.mrb[22].mxu0  ;;  %v2916_v3 = vmax.f32 %v3854_v52, %v2884_v35 }
 0x1c3   :  { %4316 = vrcp.f32 %v3289_v4  ;;  %v3291_v13 = vadd.f32 1.0, %v4299_v12  ;;  %v3247_v40 = vmul.f32 1.442695, %v3200_v61  ;;  %v5648_v46 = vpop.f32.mrb[23].mxu0  ;;  %v2917_v50 = vmax.f32 %v3856_v28, %v2885_v5  ;;  %v5654_v58 = vpop.f32.mrb[54].mxu1 }
 0x1c4   :  { %v4301_v39 = vpop.eup %4300  ;;  %4318 = vrcp.f32 %v3290_v34  ;;  %v2918_v56 = vmax.f32 %v3858_v29, %v2886_v8  ;;  %v3115_v57 = vadd.f32 %v5631_v45, %v5518_v54  ;;  %v3860_v49 = vadd.f32 %v5568_v17, %v2835_v9  ;;  %v5660_v16 = vpop.f32.mrb[55].mxu1 }
 0x1c5   :  { %v4303_v59 = vpop.eup %4302  ;;  %4320 = vrcp.f32 %v3291_v13  ;;  %v3117_v14 = vadd.f32 %v5634_v63, %v5520_v55  ;;  %v3119_v15 = vadd.f32 %v3118_v10, %v5518_v54  ;;  %v3121_v24 = vadd.f32 %v3120_v20, %v5520_v55  ;;  %v5672_v1 = vpop.f32.mrb[56].mxu1 }
 0x1c6   :  { %v4305_v21 = vpop.eup %4304  ;;  %v3292_v51 = vadd.f32 1.0, %v4303_v59  ;;  %4322 = vpow2.f32 %v3247_v40  ;;  %v3169_v22 = vadd.f32 %v3115_v57, %v2916_v3  ;;  %v2887_v48 = vmul.f32 0.2, %v3860_v49  ;;  %v5678_v40 = vpop.f32.mrb[57].mxu1 }
 0x1c7   :  { %v4307_v45 = vpop.eup %4306  ;;  %v3807_v7 = vpack.c.bf16 %v4305_v21, %v4301_v39  ;;  %v3170_v53 = vadd.f32 %v3117_v14, %v2917_v50  ;;  %v3171_v26 = vadd.f32 %v3119_v15, %v2918_v56  ;;  %v3862_v63 = vadd.f32 %v5571_v18, %v2839_v30  ;;  %v5680_v50 = vpop.f32.mrb[58].mxu1 }
 0x1c8   :  { %v4309_v6 = vpop.eup %4308  ;;  %4324 = vrcp.f32 %v3292_v51  ;;  %v3201_v17 = vsub.f32 0.0, %v3169_v22  ;;  %v3864_v9 = vadd.f32 %v5574_v19, %v2841_v2  ;;  %v5665_v10 = vpop.f32.mrb[24].mxu0  ;;  %v2919_v20 = vmax.f32 %v3860_v49, %v2887_v48 }
 0x1c9   :  { %3475 = vst [vmem:[%s5784_s8 + $0x10] sm:$0xff] %v3807_v7  ;;  %v3808_v0 = vpack.c.bf16 %v4309_v6, %v4307_v45  ;;  %v3202_v47 = vsub.f32 0.0, %v3170_v53  ;;  %v3203_v52 = vsub.f32 0.0, %v3171_v26  ;;  %v5670_v28 = vpop.f32.mrb[25].mxu0  ;;  %v2888_v29 = vmul.f32 0.2, %v3862_v63 }
 0x1ca   :  { %v4311_v60 = vpop.eup %4310  ;;  %v3249_v25 = vmul.f32 1.442695, %v3201_v17  ;;  %v2889_v18 = vmul.f32 0.2, %v3864_v9  ;;  %v3866_v19 = vadd.f32 %v5577_v23, %v2843_v37  ;;  %v3172_v35 = vadd.f32 %v3121_v24, %v2919_v20  ;;  %v2853_v2 = vpop.f32.mrb[26].mxu0 }
 0x1cb   :  { %v4313_v30 = vpop.eup %4312  ;;  %3476 = vst [vmem:[%s5784_s8 + $0x18] sm:$0xff] %v3808_v0  ;;  %v3293_v31 = vadd.f32 1.0, %v4311_v60  ;;  %v3251_v4 = vmul.f32 1.442695, %v3202_v47  ;;  %v3253_v61 = vmul.f32 1.442695, %v3203_v52  ;;  %v2920_v5 = vmax.f32 %v3862_v63, %v2888_v29 }
 0x1cc   :  { %v4315_v12 = vpop.eup %4314  ;;  %v3294_v34 = vadd.f32 1.0, %v4313_v30  ;;  %4326 = vpow2.f32 %v3249_v25  ;;  %v2921_v8 = vmax.f32 %v3864_v9, %v2889_v18  ;;  %v2855_v13 = vpop.f32.mrb[27].mxu0  ;;  %v3204_v37 = vsub.f32 0.0, %v3172_v35 }
 0x1cd   :  { %v4317_v3 = vpop.eup %4316  ;;  %4328 = vrcp.f32 %v3293_v31  ;;  %v3295_v23 = vadd.f32 1.0, %v4315_v12  ;;  %v2890_v39 = vmul.f32 0.2, %v3866_v19  ;;  %v3125_v57 = vadd.f32 %v5643_v11, %v5518_v54  ;;  %v5688_v14 = vpop.f32.mrb[59].mxu1 }
 0x1ce   :  { %v4319_v56 = vpop.eup %4318  ;;  %4330 = vrcp.f32 %v3294_v34  ;;  %v3868_v59 = vadd.f32 %v5581_v27, %v5648_v46  ;;  %v3127_v49 = vadd.f32 %v5650_v62, %v5520_v55  ;;  %v3255_v51 = vmul.f32 1.442695, %v3204_v37  ;;  %v5701_v26 = vpop.f32.mrb[60].mxu1 }
 0x1cf   :  { %v4321_v15 = vpop.eup %4320  ;;  %v3809_v21 = vpack.c.bf16 %v4319_v56, %v4317_v3  ;;  %4332 = vrcp.f32 %v3295_v23  ;;  %v2922_v22 = vmax.f32 %v3866_v19, %v2890_v39  ;;  %v3173_v45 = vadd.f32 %v3125_v57, %v2920_v5  ;;  %v5705_v20 = vpop.f32.mrb[61].mxu1 }
 0x1d0   :  { %v4323_v24 = vpop.eup %4322  ;;  %4334 = vpow2.f32 %v3251_v4  ;;  %v2891_v7 = vmul.f32 0.2, %v3868_v59  ;;  %v3174_v48 = vadd.f32 %v3127_v49, %v2921_v8  ;;  %v5690_v53 = vpop.f32.mrb[28].mxu0  ;;  %v3129_v11 = vadd.f32 %v5654_v58, %v5518_v54 }
 0x1d1   :  { %3477 = vst [vmem:[%s5784_s8 + $0x20] sm:$0xff] %v3809_v21  ;;  %v3296_v27 = vadd.f32 1.0, %v4323_v24  ;;  %4336 = vpow2.f32 %v3253_v61  ;;  %v3131_v46 = vadd.f32 %v5660_v16, %v5520_v55  ;;  %v5699_v62 = vpop.f32.mrb[29].mxu0  ;;  %v3205_v17 = vsub.f32 0.0, %v3173_v45  ;;  %v5711_v60 = vpop.f32.mrb[62].mxu1 }
 0x1d2   :  { %v4325_v6 = vpop.eup %4324  ;;  %4338 = vpow2.f32 %v3255_v51  ;;  %v2923_v63 = vmax.f32 %v3868_v59, %v2891_v7  ;;  %v3206_v9 = vsub.f32 0.0, %v3174_v48  ;;  %v5703_v0 = vpop.f32.mrb[30].mxu0  ;;  %v3175_v52 = vadd.f32 %v3129_v11, %v2922_v22 }
 0x1d3   :  { %v3810_v47 = vpack.c.bf16 %v4325_v6, %v4321_v15  ;;  %4340 = vrcp.f32 %v3296_v27  ;;  %v3870_v58 = vadd.f32 %v5585_v32, %v5665_v10  ;;  %v5709_v16 = vpop.f32.mrb[31].mxu0  ;;  %v3257_v25 = vmul.f32 1.442695, %v3205_v17  ;;  %v5715_v30 = vpop.f32.mrb[63].mxu1 }
 0x1d4   :  { %v3259_v29 = vmul.f32 1.442695, %v3206_v9  ;;  %v3176_v18 = vadd.f32 %v3131_v46, %v2923_v63  ;;  %v3872_v19 = vadd.f32 %v5588_v33, %v5670_v28  ;;  %v3207_v31 = vsub.f32 0.0, %v3175_v52 }
 0x1d5   :  { %3478 = vst [vmem:[%s5784_s8 + $0x28] sm:$0xff] %v3810_v47  ;;  %v2892_v4 = vmul.f32 0.2, %v3870_v58  ;;  %v3874_v32 = vadd.f32 %v5591_v36, %v2853_v2  ;;  %v3135_v10 = vadd.f32 %v5672_v1, %v5518_v54  ;;  %4342 = vpow2.f32 %v3257_v25 }
 0x1d6   :  { %v4327_v61 = vpop.eup %4326  ;;  %v3208_v35 = vsub.f32 0.0, %v3176_v18  ;;  %v2893_v12 = vmul.f32 0.2, %v3872_v19  ;;  %v3876_v34 = vadd.f32 %v5594_v38, %v2855_v13  ;;  %4344 = vpow2.f32 %v3259_v29 }
 0x1d7   :  { %v4329_v33 = vpop.eup %4328  ;;  %v3297_v28 = vadd.f32 1.0, %v4327_v61  ;;  %v3261_v5 = vmul.f32 1.442695, %v3207_v31  ;;  %v2924_v8 = vmax.f32 %v3870_v58, %v2892_v4  ;;  %v2894_v39 = vmul.f32 0.2, %v3874_v32 }
 0x1d8   :  { %v4331_v3 = vpop.eup %4330  ;;  %v3263_v23 = vmul.f32 1.442695, %v3208_v35  ;;  %v2925_v37 = vmax.f32 %v3872_v19, %v2893_v12  ;;  %v2895_v56 = vmul.f32 0.2, %v3876_v34  ;;  %v3137_v57 = vadd.f32 %v5678_v40, %v5520_v55 }
 0x1d9   :  { %v4333_v36 = vpop.eup %4332  ;;  %v3811_v2 = vpack.c.bf16 %v4331_v3, %v4329_v33  ;;  %4346 = vrcp.f32 %v3297_v28  ;;  %v3177_v1 = vadd.f32 %v3135_v10, %v2924_v8  ;;  %v2926_v38 = vmax.f32 %v3874_v32, %v2894_v39 }
 0x1da   :  { %v4335_v59 = vpop.eup %4334  ;;  %4348 = vpow2.f32 %v3261_v5  ;;  %v2927_v13 = vmax.f32 %v3876_v34, %v2895_v56  ;;  %v3139_v49 = vadd.f32 %v5680_v50, %v5518_v54  ;;  %v3178_v22 = vadd.f32 %v3137_v57, %v2925_v37 }
 0x1db   :  { %v4337_v15 = vpop.eup %4336  ;;  %3479 = vst [vmem:[%s5784_s8 + $0x30] sm:$0xff] %v3811_v2  ;;  %v3298_v21 = vadd.f32 1.0, %v4335_v59  ;;  %4350 = vpow2.f32 %v3263_v23  ;;  %v3209_v51 = vsub.f32 0.0, %v3177_v1  ;;  %v3141_v40 = vadd.f32 %v5688_v14, %v5520_v55 }
 0x1dc   :  { %v4339_v24 = vpop.eup %4338  ;;  %v3299_v45 = vadd.f32 1.0, %v4337_v15  ;;  %v3179_v7 = vadd.f32 %v3139_v49, %v2926_v38  ;;  %v3878_v48 = vadd.f32 %v5597_v44, %v5690_v53  ;;  %v3210_v46 = vsub.f32 0.0, %v3178_v22 }
 0x1dd   :  { %v4341_v27 = vpop.eup %4340  ;;  %4352 = vrcp.f32 %v3298_v21  ;;  %v3300_v50 = vadd.f32 1.0, %v4339_v24  ;;  %v3265_v11 = vmul.f32 1.442695, %v3209_v51  ;;  %v3180_v63 = vadd.f32 %v3141_v40, %v2927_v13 }
 0x1de   :  { %v3812_v6 = vpack.c.bf16 %v4341_v27, %v4333_v36  ;;  %4354 = vrcp.f32 %v3299_v45  ;;  %v3211_v17 = vsub.f32 0.0, %v3179_v7  ;;  %v3267_v9 = vmul.f32 1.442695, %v3210_v46 }
 0x1df   :  { %4356 = vrcp.f32 %v3300_v50  ;;  %v2896_v47 = vmul.f32 0.2, %v3878_v48  ;;  %v3880_v52 = vadd.f32 %v5601_v41, %v5699_v62  ;;  %v4343_v58 = vpop.eup %4342  ;;  %v3212_v14 = vsub.f32 0.0, %v3180_v63 }
 0x1e0   :  { %3480 = vst [vmem:[%s5784_s8 + $0x38] sm:$0xff] %v3812_v6  ;;  %4358 = vpow2.f32 %v3265_v11  ;;  %v3269_v44 = vmul.f32 1.442695, %v3211_v17  ;;  %v3882_v53 = vadd.f32 %v5605_v43, %v5703_v0  ;;  %v4345_v25 = vpop.eup %4344  ;;  %v3301_v29 = vadd.f32 1.0, %v4343_v58 }
 0x1e1   :  { %4360 = vpow2.f32 %v3267_v9  ;;  %v2928_v18 = vmax.f32 %v3878_v48, %v2896_v47  ;;  %v2897_v19 = vmul.f32 0.2, %v3880_v52  ;;  %v3302_v31 = vadd.f32 1.0, %v4345_v25 }
 0x1e2   :  { %4362 = vpow2.f32 %v3269_v44  ;;  %v3271_v4 = vmul.f32 1.442695, %v3212_v14  ;;  %v2898_v41 = vmul.f32 0.2, %v3882_v53  ;;  %v3145_v10 = vadd.f32 %v5701_v26, %v5518_v54 }
 0x1e3   :  { %v4347_v62 = vpop.eup %4346  ;;  %4364 = vrcp.f32 %v3301_v29  ;;  %v2929_v32 = vmax.f32 %v3880_v52, %v2897_v19  ;;  %v3884_v61 = vadd.f32 %v5615_v42, %v5709_v16  ;;  %v3147_v0 = vadd.f32 %v5705_v20, %v5520_v55 }
 0x1e4   :  { %v4349_v35 = vpop.eup %4348  ;;  %4366 = vrcp.f32 %v3302_v31  ;;  %v2930_v43 = vmax.f32 %v3882_v53, %v2898_v41  ;;  %v3149_v12 = vadd.f32 %v5711_v60, %v5518_v54  ;;  %v3181_v28 = vadd.f32 %v3145_v10, %v2928_v18 }
 0x1e5   :  { %v4351_v34 = vpop.eup %4350  ;;  %v3303_v33 = vadd.f32 1.0, %v4349_v35  ;;  %4368 = vpow2.f32 %v3271_v4  ;;  %v2899_v5 = vmul.f32 0.2, %v3884_v61  ;;  %v3182_v3 = vadd.f32 %v3147_v0, %v2929_v32 }
 0x1e6   :  { %v3304_v8 = vadd.f32 1.0, %v4351_v34  ;;  %v3183_v26 = vadd.f32 %v3149_v12, %v2930_v43  ;;  %v3213_v42 = vsub.f32 0.0, %v3181_v28  ;;  %v3151_v37 = vadd.f32 %v5715_v30, %v5520_v55 }
 0x1e7   :  { %v4353_v23 = vpop.eup %4352  ;;  %4370 = vrcp.f32 %v3303_v33  ;;  %v2931_v16 = vmax.f32 %v3884_v61, %v2899_v5  ;;  %v3214_v56 = vsub.f32 0.0, %v3182_v3 }
 0x1e8   :  { %v4355_v39 = vpop.eup %4354  ;;  %v3813_v20 = vpack.c.bf16 %v4353_v23, %v4347_v62  ;;  %4372 = vrcp.f32 %v3304_v8  ;;  %v3215_v54 = vsub.f32 0.0, %v3183_v26  ;;  %v3273_v36 = vmul.f32 1.442695, %v3213_v42 }
 0x1e9   :  { %v4357_v60 = vpop.eup %4356  ;;  %v3184_v2 = vadd.f32 %v3151_v37, %v2931_v16  ;;  %v3275_v59 = vmul.f32 1.442695, %v3214_v56 }
 0x1ea   :  { %v4359_v1 = vpop.eup %4358  ;;  %3481 = vst [vmem:[%s5784_s8 + $0x40] sm:$0xff] %v3813_v20  ;;  %v3814_v57 = vpack.c.bf16 %v4357_v60, %v4355_v39  ;;  %4374 = vpow2.f32 %v3273_v36  ;;  %v3277_v15 = vmul.f32 1.442695, %v3215_v54 }
 0x1eb   :  { %v4361_v38 = vpop.eup %4360  ;;  %v3305_v13 = vadd.f32 1.0, %v4359_v1  ;;  %v3216_v49 = vsub.f32 0.0, %v3184_v2  ;;  %4376 = vpow2.f32 %v3275_v59 }
 0x1ec   :  { %v4363_v55 = vpop.eup %4362  ;;  %3482 = vst [vmem:[%s5784_s8 + $0x48] sm:$0xff] %v3814_v57  ;;  %v3306_v30 = vadd.f32 1.0, %v4361_v38 }
 0x1ed   :  { %v4365_v21 = vpop.eup %4364  ;;  %4378 = vrcp.f32 %v3305_v13  ;;  %v3307_v51 = vadd.f32 1.0, %v4363_v55  ;;  %v3279_v22 = vmul.f32 1.442695, %v3216_v49 }
 0x1ee   :  { %v4367_v24 = vpop.eup %4366  ;;  %4380 = vrcp.f32 %v3306_v30 }
 0x1ef   :  { %v4369_v45 = vpop.eup %4368  ;;  %v3815_v7 = vpack.c.bf16 %v4367_v24, %v4365_v21  ;;  %4382 = vrcp.f32 %v3307_v51 }
 0x1f0   :  { %v3308_v40 = vadd.f32 1.0, %v4369_v45  ;;  %4384 = vpow2.f32 %v3277_v15 }
 0x1f1   :  { %v4371_v48 = vpop.eup %4370  ;;  %3483 = vst [vmem:[%s5784_s8 + $0x50] sm:$0xff] %v3815_v7  ;;  %4386 = vpow2.f32 %v3279_v22 }
 0x1f2   :  { %v4373_v27 = vpop.eup %4372  ;;  %4388 = vrcp.f32 %v3308_v40 }
 0x1f3   :  { %v3816_v50 = vpack.c.bf16 %v4373_v27, %v4371_v48 }
 0x1f4   :  { %v4375_v11 = vpop.eup %4374 }
 0x1f5   :  { %3484 = vst [vmem:[%s5784_s8 + $0x58] sm:$0xff] %v3816_v50  ;;  %v4377_v46 = vpop.eup %4376  ;;  %v3309_v6 = vadd.f32 1.0, %v4375_v11 }
 0x1f6   :  { %v3310_v63 = vadd.f32 1.0, %v4377_v46 }
 0x1f7   :  { %v4379_v17 = vpop.eup %4378  ;;  %4390 = vrcp.f32 %v3309_v6 }
 0x1f8   :  { %v4381_v9 = vpop.eup %4380  ;;  %4392 = vrcp.f32 %v3310_v63 }
 0x1f9   :  { %v4383_v47 = vpop.eup %4382  ;;  %v3817_v52 = vpack.c.bf16 %v4381_v9, %v4379_v17 }
 0x1fa   :  { %v4385_v58 = vpop.eup %4384 }
 0x1fb   :  { %v4387_v44 = vpop.eup %4386  ;;  %3485 = vst [vmem:[%s5784_s8 + $0x60] sm:$0xff] %v3817_v52  ;;  %v3311_v14 = vadd.f32 1.0, %v4385_v58 }
 0x1fc   :  { %v4389_v53 = vpop.eup %4388  ;;  %v3312_v25 = vadd.f32 1.0, %v4387_v44 }
 0x1fd   :  { %v3818_v29 = vpack.c.bf16 %v4389_v53, %v4383_v47  ;;  %4394 = vrcp.f32 %v3311_v14 }
 0x1fe   :  { %4396 = vrcp.f32 %v3312_v25 }
 0x1ff   :  { %3486 = vst [vmem:[%s5784_s8 + $0x68] sm:$0xff] %v3818_v29 }
 0x201   :  { %v4391_v18 = vpop.eup %4390 }
 0x202   :  { %v4393_v19 = vpop.eup %4392 }
 0x203   :  { %v3819_v31 = vpack.c.bf16 %v4393_v19, %v4391_v18 }
 0x205   :  { %3487 = vst [vmem:[%s5784_s8 + $0x70] sm:$0xff] %v3819_v31 }
 0x207   :  { %v4395_v4 = vpop.eup %4394 }
 0x208   :  { %v4397_v41 = vpop.eup %4396 }
 0x209   :  { %v3820_v62 = vpack.c.bf16 %v4397_v41, %v4395_v4 }
 0x20b   :  { %3488 = vst [vmem:[%s5784_s8 + $0x78] sm:$0xff] %v3820_v62 }

</bundles_post_ra>
